<compile_context>
chip_gen: v7x
topology: tpu7x:2x2x1
jax: 0.10.0
libtpu: 0.0.40
codegen_flags: <defaults>
</compile_context>

<pallas_src>
import jax
import jax.numpy as jnp
from jax.experimental import pallas as pl
from jax.experimental.pallas import tpu as pltpu

# ----------------------------- model config ---------------------------------
NUM_STATES = 3      # Pendulum-v1 observation dim
NUM_ACTIONS = 1     # Pendulum-v1 action dim
S_H1, S_H2 = 16, 32
A_H1 = 32
C_H = 256
OUT = 1


# ------------------------------ Pallas kernel --------------------------------
def critic_kernel(sT_ref, aT_ref,
                  ws1_ref, bs1_ref, ws2_ref, bs2_ref,
                  wa1_ref, ba1_ref,
                  wc1s_ref, wc1a_ref, bc1_ref,
                  wc2_ref, bc2_ref, wc3_ref, bc3_ref,
                  o_ref):
    """Fused Critic MLP in batch-on-lanes layout: activations are (features, TB)."""
    f32 = jnp.float32
    # state branch
    hs = jnp.maximum(
        jnp.dot(ws1_ref[...], sT_ref[...], preferred_element_type=f32) + bs1_ref[...], 0.0)   # (16, TB)
    hs = jnp.maximum(
        jnp.dot(ws2_ref[...], hs, preferred_element_type=f32) + bs2_ref[...], 0.0)            # (32, TB)
    # action branch
    ha = jnp.maximum(
        jnp.dot(wa1_ref[...], aT_ref[...], preferred_element_type=f32) + ba1_ref[...], 0.0)   # (32, TB)
    # concat layer, with the concat folded into a split-weight sum
    h = jnp.maximum(
        jnp.dot(wc1s_ref[...], hs, preferred_element_type=f32)
        + jnp.dot(wc1a_ref[...], ha, preferred_element_type=f32)
        + bc1_ref[...], 0.0)                                                                   # (256, TB)
    h = jnp.maximum(
        jnp.dot(wc2_ref[...], h, preferred_element_type=f32) + bc2_ref[...], 0.0)              # (256, TB)
    o_ref[...] = (jnp.dot(wc3_ref[...], h, preferred_element_type=f32)
                  + bc3_ref[...]).astype(o_ref.dtype)                                          # (1, TB)


# ------------------------------- wrapper -------------------------------------
def critic_forward(state, action, params, *, block_b=512):
    """state: (B, 3), action: (B, 1) -> q: (B, 1)."""
    assert block_b % 128 == 0, "batch tile must be a multiple of 128 lanes"
    B = state.shape[0]
    num_tiles = pl.cdiv(B, block_b)
    B_pad = num_tiles * block_b
    if B_pad != B:
        pad = B_pad - B
        state = jnp.pad(state, ((0, pad), (0, 0)))
        action = jnp.pad(action, ((0, pad), (0, 0)))

    # batch-on-lanes layout (glue transposes stay in XLA)
    sT = state.T        # (3, B_pad)
    aT = action.T       # (1, B_pad)

    (ws1, bs1, ws2, bs2, wa1, ba1, wc1, bc1, wc2, bc2, wc3, bc3) = params
    # split the concat-layer first weight (256, 64) into state/action halves
    wc1s = wc1[:, :S_H2]    # (256, 32)
    wc1a = wc1[:, S_H2:]    # (256, 32)

    weight_args = (ws1, bs1, ws2, bs2, wa1, ba1,
                   wc1s, wc1a, bc1, wc2, bc2, wc3, bc3)

    def resident(w):  # full-array block, same index every grid step -> VMEM-resident
        return pl.BlockSpec(w.shape, lambda i: (0, 0))

    flops = 2 * B_pad * (NUM_STATES * S_H1 + S_H1 * S_H2 + NUM_ACTIONS * A_H1
                         + (S_H2 + A_H1) * C_H + C_H * C_H + C_H * OUT)
    param_bytes = sum(int(w.size) * w.dtype.itemsize for w in weight_args)
    bytes_accessed = B_pad * (NUM_STATES + NUM_ACTIONS + OUT) * 4 + param_bytes

    qT = pl.pallas_call(
        critic_kernel,
        out_shape=jax.ShapeDtypeStruct((OUT, B_pad), jnp.float32),
        grid=(num_tiles,),
        in_specs=[
            pl.BlockSpec((NUM_STATES, block_b), lambda i: (0, i)),   # state^T tile
            pl.BlockSpec((NUM_ACTIONS, block_b), lambda i: (0, i)),  # action^T tile
        ] + [resident(w) for w in weight_args],
        out_specs=pl.BlockSpec((OUT, block_b), lambda i: (0, i)),    # lane-dense output
        compiler_params=pltpu.CompilerParams(
            dimension_semantics=("parallel",)),
        cost_estimate=pl.CostEstimate(flops=flops, transcendentals=0,
                                      bytes_accessed=bytes_accessed),
    )(sT, aT, *weight_args)

    return qT.T[:B]   # back to (B, 1)


# --------------------------- deterministic params ----------------------------
def init_params(key):
    """PyTorch-style Linear init (uniform +-1/sqrt(fan_in)); weights kept in
    native PyTorch (out, in) orientation, biases stored as (out, 1)."""
    def linear(k, fan_in, fan_out):
        kw, kb = jax.random.split(k)
        bound = 1.0 / jnp.sqrt(fan_in)
        w = jax.random.uniform(kw, (fan_out, fan_in), jnp.float32, -bound, bound)
        b = jax.random.uniform(kb, (fan_out, 1), jnp.float32, -bound, bound)
        return w, b

    keys = jax.random.split(key, 6)
    ws1, bs1 = linear(keys[0], NUM_STATES, S_H1)        # state_layer[0]
    ws2, bs2 = linear(keys[1], S_H1, S_H2)              # state_layer[2]
    wa1, ba1 = linear(keys[2], NUM_ACTIONS, A_H1)       # action_layer[0]
    wc1, bc1 = linear(keys[3], S_H2 + A_H1, C_H)        # concat_layer[0]
    wc2, bc2 = linear(keys[4], C_H, C_H)                # concat_layer[2]
    wc3, bc3 = linear(keys[5], C_H, OUT)                # concat_layer[4]
    return (ws1, bs1, ws2, bs2, wa1, ba1, wc1, bc1, wc2, bc2, wc3, bc3)


# Pure-JAX reference (mirrors the PyTorch forward) for correctness checking.
def critic_ref(state, action, params):
    ws1, bs1, ws2, bs2, wa1, ba1, wc1, bc1, wc2, bc2, wc3, bc3 = params
    hs = jax.nn.relu(state @ ws1.T + bs1.T)
    hs = jax.nn.relu(hs @ ws2.T + bs2.T)
    ha = jax.nn.relu(action @ wa1.T + ba1.T)
    x = jnp.concatenate([hs, ha], axis=1)
    h = jax.nn.relu(x @ wc1.T + bc1.T)
    h = jax.nn.relu(h @ wc2.T + bc2.T)
    return h @ wc3.T + bc3.T


# ------------------------------------ main ------------------------------------
if __name__ == "__main__":
    key = jax.random.PRNGKey(0)
    kp, ks, ka = jax.random.split(key, 3)

    B = 200  # deliberately not a multiple of the batch tile -> exercises padding
    params = init_params(kp)
    state = jax.random.normal(ks, (B, NUM_STATES), jnp.float32)
    action = jax.random.normal(ka, (B, NUM_ACTIONS), jnp.float32)

    q = critic_forward(state, action, params, block_b=128)
    q = jax.block_until_ready(q)

    ref = critic_ref(state, action, params)
    assert q.shape == (B, OUT)
    assert jnp.allclose(q, ref, atol=1e-4, rtol=1e-4), "mismatch vs reference"

    print("KERNEL_OK")
</pallas_src>

<mosaic_0001>
module attributes {stable_mosaic.version = 11 : i64} {
  func.func @critic_kernel(%arg0: i32, %arg1: memref<3x128xf32, #tpu.memory_space<vmem>>, %arg2: memref<1x128xf32, #tpu.memory_space<vmem>>, %arg3: memref<16x3xf32, #tpu.memory_space<vmem>>, %arg4: memref<16x1xf32, #tpu.memory_space<vmem>>, %arg5: memref<32x16xf32, #tpu.memory_space<vmem>>, %arg6: memref<32x1xf32, #tpu.memory_space<vmem>>, %arg7: memref<32x1xf32, #tpu.memory_space<vmem>>, %arg8: memref<32x1xf32, #tpu.memory_space<vmem>>, %arg9: memref<256x32xf32, #tpu.memory_space<vmem>>, %arg10: memref<256x32xf32, #tpu.memory_space<vmem>>, %arg11: memref<256x1xf32, #tpu.memory_space<vmem>>, %arg12: memref<256x256xf32, #tpu.memory_space<vmem>>, %arg13: memref<256x1xf32, #tpu.memory_space<vmem>>, %arg14: memref<1x256xf32, #tpu.memory_space<vmem>>, %arg15: memref<1x1xf32, #tpu.memory_space<vmem>>, %arg16: memref<1x128xf32, #tpu.memory_space<vmem>>) attributes {dimension_semantics = [#tpu.dimension_semantics<parallel>], iteration_bounds = array<i64: 2>, scalar_prefetch = 0 : i64, scratch_operands = 0 : i64, tpu.core_type = #tpu.core_type<tc>, window_params = [{transform_indices = @transform_0, window_bounds = array<i64: 3, 128>}, {transform_indices = @transform_1, window_bounds = array<i64: 1, 128>}, {pipeline_mode = #tpu.pipeline_mode<synchronous>, transform_indices = @transform_2, window_bounds = array<i64: 16, 3>}, {pipeline_mode = #tpu.pipeline_mode<synchronous>, transform_indices = @transform_3, window_bounds = array<i64: 16, 1>}, {pipeline_mode = #tpu.pipeline_mode<synchronous>, transform_indices = @transform_4, window_bounds = array<i64: 32, 16>}, {pipeline_mode = #tpu.pipeline_mode<synchronous>, transform_indices = @transform_5, window_bounds = array<i64: 32, 1>}, {pipeline_mode = #tpu.pipeline_mode<synchronous>, transform_indices = @transform_6, window_bounds = array<i64: 32, 1>}, {pipeline_mode = #tpu.pipeline_mode<synchronous>, transform_indices = @transform_7, window_bounds = array<i64: 32, 1>}, {pipeline_mode = #tpu.pipeline_mode<synchronous>, transform_indices = @transform_8, window_bounds = array<i64: 256, 32>}, {pipeline_mode = #tpu.pipeline_mode<synchronous>, transform_indices = @transform_9, window_bounds = array<i64: 256, 32>}, {pipeline_mode = #tpu.pipeline_mode<synchronous>, transform_indices = @transform_10, window_bounds = array<i64: 256, 1>}, {pipeline_mode = #tpu.pipeline_mode<synchronous>, transform_indices = @transform_11, window_bounds = array<i64: 256, 256>}, {pipeline_mode = #tpu.pipeline_mode<synchronous>, transform_indices = @transform_12, window_bounds = array<i64: 256, 1>}, {pipeline_mode = #tpu.pipeline_mode<synchronous>, transform_indices = @transform_13, window_bounds = array<i64: 1, 256>}, {pipeline_mode = #tpu.pipeline_mode<synchronous>, transform_indices = @transform_14, window_bounds = array<i64: 1, 1>}, {transform_indices = @transform_15, window_bounds = array<i64: 1, 128>}]} {
    %c0 = arith.constant 0 : index
    %c0_0 = arith.constant 0 : index
    %0 = vector.load %arg3[%c0, %c0_0] : memref<16x3xf32, #tpu.memory_space<vmem>>, vector<16x3xf32>
    %c0_1 = arith.constant 0 : index
    %c0_2 = arith.constant 0 : index
    %1 = vector.load %arg1[%c0_1, %c0_2] : memref<3x128xf32, #tpu.memory_space<vmem>>, vector<3x128xf32>
    %cst = arith.constant dense<0.000000e+00> : vector<16x128xf32>
    %2 = tpu.matmul %0, %1, %cst {dimension_numbers = #tpu.dot_dimension_numbers<[1], [0], [0], [1], [0, 0, 1, 1], [], []>} : vector<16x3xf32>, vector<3x128xf32>, vector<16x128xf32> -> vector<16x128xf32>
    %c0_3 = arith.constant 0 : index
    %c0_4 = arith.constant 0 : index
    %3 = vector.load %arg4[%c0_3, %c0_4] : memref<16x1xf32, #tpu.memory_space<vmem>>, vector<16x1xf32>
    %4 = vector.broadcast %3 : vector<16x1xf32> to vector<16x128xf32>
    %5 = arith.addf %2, %4 : vector<16x128xf32>
    %cst_5 = arith.constant 0.000000e+00 : f32
    %6 = vector.broadcast %cst_5 : f32 to vector<16x128xf32>
    %7 = arith.maximumf %5, %6 : vector<16x128xf32>
    %c0_6 = arith.constant 0 : index
    %c0_7 = arith.constant 0 : index
    %8 = vector.load %arg5[%c0_6, %c0_7] : memref<32x16xf32, #tpu.memory_space<vmem>>, vector<32x16xf32>
    %cst_8 = arith.constant dense<0.000000e+00> : vector<32x128xf32>
    %9 = tpu.matmul %8, %7, %cst_8 {dimension_numbers = #tpu.dot_dimension_numbers<[1], [0], [0], [1], [0, 0, 1, 1], [], []>} : vector<32x16xf32>, vector<16x128xf32>, vector<32x128xf32> -> vector<32x128xf32>
    %c0_9 = arith.constant 0 : index
    %c0_10 = arith.constant 0 : index
    %10 = vector.load %arg6[%c0_9, %c0_10] : memref<32x1xf32, #tpu.memory_space<vmem>>, vector<32x1xf32>
    %11 = vector.broadcast %10 : vector<32x1xf32> to vector<32x128xf32>
    %12 = arith.addf %9, %11 : vector<32x128xf32>
    %cst_11 = arith.constant 0.000000e+00 : f32
    %13 = vector.broadcast %cst_11 : f32 to vector<32x128xf32>
    %14 = arith.maximumf %12, %13 : vector<32x128xf32>
    %c0_12 = arith.constant 0 : index
    %c0_13 = arith.constant 0 : index
    %15 = vector.load %arg7[%c0_12, %c0_13] : memref<32x1xf32, #tpu.memory_space<vmem>>, vector<32x1xf32>
    %c0_14 = arith.constant 0 : index
    %c0_15 = arith.constant 0 : index
    %16 = vector.load %arg2[%c0_14, %c0_15] : memref<1x128xf32, #tpu.memory_space<vmem>>, vector<1x128xf32>
    %cst_16 = arith.constant dense<0.000000e+00> : vector<32x128xf32>
    %17 = tpu.matmul %15, %16, %cst_16 {dimension_numbers = #tpu.dot_dimension_numbers<[1], [0], [0], [1], [0, 0, 1, 1], [], []>} : vector<32x1xf32>, vector<1x128xf32>, vector<32x128xf32> -> vector<32x128xf32>
    %c0_17 = arith.constant 0 : index
    %c0_18 = arith.constant 0 : index
    %18 = vector.load %arg8[%c0_17, %c0_18] : memref<32x1xf32, #tpu.memory_space<vmem>>, vector<32x1xf32>
    %19 = vector.broadcast %18 : vector<32x1xf32> to vector<32x128xf32>
    %20 = arith.addf %17, %19 : vector<32x128xf32>
    %cst_19 = arith.constant 0.000000e+00 : f32
    %21 = vector.broadcast %cst_19 : f32 to vector<32x128xf32>
    %22 = arith.maximumf %20, %21 : vector<32x128xf32>
    %c0_20 = arith.constant 0 : index
    %c0_21 = arith.constant 0 : index
    %23 = vector.load %arg9[%c0_20, %c0_21] : memref<256x32xf32, #tpu.memory_space<vmem>>, vector<256x32xf32>
    %cst_22 = arith.constant dense<0.000000e+00> : vector<256x128xf32>
    %24 = tpu.matmul %23, %14, %cst_22 {dimension_numbers = #tpu.dot_dimension_numbers<[1], [0], [0], [1], [0, 0, 1, 1], [], []>} : vector<256x32xf32>, vector<32x128xf32>, vector<256x128xf32> -> vector<256x128xf32>
    %c0_23 = arith.constant 0 : index
    %c0_24 = arith.constant 0 : index
    %25 = vector.load %arg10[%c0_23, %c0_24] : memref<256x32xf32, #tpu.memory_space<vmem>>, vector<256x32xf32>
    %cst_25 = arith.constant dense<0.000000e+00> : vector<256x128xf32>
    %26 = tpu.matmul %25, %22, %cst_25 {dimension_numbers = #tpu.dot_dimension_numbers<[1], [0], [0], [1], [0, 0, 1, 1], [], []>} : vector<256x32xf32>, vector<32x128xf32>, vector<256x128xf32> -> vector<256x128xf32>
    %27 = arith.addf %24, %26 : vector<256x128xf32>
    %c0_26 = arith.constant 0 : index
    %c0_27 = arith.constant 0 : index
    %28 = vector.load %arg11[%c0_26, %c0_27] : memref<256x1xf32, #tpu.memory_space<vmem>>, vector<256x1xf32>
    %29 = vector.broadcast %28 : vector<256x1xf32> to vector<256x128xf32>
    %30 = arith.addf %27, %29 : vector<256x128xf32>
    %cst_28 = arith.constant 0.000000e+00 : f32
    %31 = vector.broadcast %cst_28 : f32 to vector<256x128xf32>
    %32 = arith.maximumf %30, %31 : vector<256x128xf32>
    %c0_29 = arith.constant 0 : index
    %c0_30 = arith.constant 0 : index
    %33 = vector.load %arg12[%c0_29, %c0_30] : memref<256x256xf32, #tpu.memory_space<vmem>>, vector<256x256xf32>
    %cst_31 = arith.constant dense<0.000000e+00> : vector<256x128xf32>
    %34 = tpu.matmul %33, %32, %cst_31 {dimension_numbers = #tpu.dot_dimension_numbers<[1], [0], [0], [1], [0, 0, 1, 1], [], []>} : vector<256x256xf32>, vector<256x128xf32>, vector<256x128xf32> -> vector<256x128xf32>
    %c0_32 = arith.constant 0 : index
    %c0_33 = arith.constant 0 : index
    %35 = vector.load %arg13[%c0_32, %c0_33] : memref<256x1xf32, #tpu.memory_space<vmem>>, vector<256x1xf32>
    %36 = vector.broadcast %35 : vector<256x1xf32> to vector<256x128xf32>
    %37 = arith.addf %34, %36 : vector<256x128xf32>
    %cst_34 = arith.constant 0.000000e+00 : f32
    %38 = vector.broadcast %cst_34 : f32 to vector<256x128xf32>
    %39 = arith.maximumf %37, %38 : vector<256x128xf32>
    %c0_35 = arith.constant 0 : index
    %c0_36 = arith.constant 0 : index
    %40 = vector.load %arg14[%c0_35, %c0_36] : memref<1x256xf32, #tpu.memory_space<vmem>>, vector<1x256xf32>
    %cst_37 = arith.constant dense<0.000000e+00> : vector<1x128xf32>
    %41 = tpu.matmul %40, %39, %cst_37 {dimension_numbers = #tpu.dot_dimension_numbers<[1], [0], [0], [1], [0, 0, 1, 1], [], []>} : vector<1x256xf32>, vector<256x128xf32>, vector<1x128xf32> -> vector<1x128xf32>
    %c0_38 = arith.constant 0 : index
    %c0_39 = arith.constant 0 : index
    %42 = vector.load %arg15[%c0_38, %c0_39] : memref<1x1xf32, #tpu.memory_space<vmem>>, vector<1x1xf32>
    %43 = vector.broadcast %42 : vector<1x1xf32> to vector<1x128xf32>
    %44 = arith.addf %41, %43 : vector<1x128xf32>
    %c0_40 = arith.constant 0 : index
    %c0_41 = arith.constant 0 : index
    %45 = vector.load %arg16[%c0_40, %c0_41] : memref<1x128xf32, #tpu.memory_space<vmem>>, vector<1x128xf32>
    tpu.vector_store %arg16[%c0_40, %c0_41], %44 {strides = array<i32>} : memref<1x128xf32, #tpu.memory_space<vmem>>, vector<1x128xf32>,
    return
  }
  func.func @transform_0(%arg0: i32) -> (i32, i32) {
    %c0_i32 = arith.constant 0 : i32
    %c0_i32_0 = arith.constant 0 : i32
    return %c0_i32, %arg0 : i32, i32
  }
  func.func @transform_1(%arg0: i32) -> (i32, i32) {
    %c0_i32 = arith.constant 0 : i32
    %c0_i32_0 = arith.constant 0 : i32
    return %c0_i32, %arg0 : i32, i32
  }
  func.func @transform_2(%arg0: i32) -> (i32, i32) {
    %c0_i32 = arith.constant 0 : i32
    %c0_i32_0 = arith.constant 0 : i32
    %c0_i32_1 = arith.constant 0 : i32
    return %c0_i32, %c0_i32_0 : i32, i32
  }
  func.func @transform_3(%arg0: i32) -> (i32, i32) {
    %c0_i32 = arith.constant 0 : i32
    %c0_i32_0 = arith.constant 0 : i32
    %c0_i32_1 = arith.constant 0 : i32
    return %c0_i32, %c0_i32_0 : i32, i32
  }
  func.func @transform_4(%arg0: i32) -> (i32, i32) {
    %c0_i32 = arith.constant 0 : i32
    %c0_i32_0 = arith.constant 0 : i32
    %c0_i32_1 = arith.constant 0 : i32
    return %c0_i32, %c0_i32_0 : i32, i32
  }
  func.func @transform_5(%arg0: i32) -> (i32, i32) {
    %c0_i32 = arith.constant 0 : i32
    %c0_i32_0 = arith.constant 0 : i32
    %c0_i32_1 = arith.constant 0 : i32
    return %c0_i32, %c0_i32_0 : i32, i32
  }
  func.func @transform_6(%arg0: i32) -> (i32, i32) {
    %c0_i32 = arith.constant 0 : i32
    %c0_i32_0 = arith.constant 0 : i32
    %c0_i32_1 = arith.constant 0 : i32
    return %c0_i32, %c0_i32_0 : i32, i32
  }
  func.func @transform_7(%arg0: i32) -> (i32, i32) {
    %c0_i32 = arith.constant 0 : i32
    %c0_i32_0 = arith.constant 0 : i32
    %c0_i32_1 = arith.constant 0 : i32
    return %c0_i32, %c0_i32_0 : i32, i32
  }
  func.func @transform_8(%arg0: i32) -> (i32, i32) {
    %c0_i32 = arith.constant 0 : i32
    %c0_i32_0 = arith.constant 0 : i32
    %c0_i32_1 = arith.constant 0 : i32
    return %c0_i32, %c0_i32_0 : i32, i32
  }
  func.func @transform_9(%arg0: i32) -> (i32, i32) {
    %c0_i32 = arith.constant 0 : i32
    %c0_i32_0 = arith.constant 0 : i32
    %c0_i32_1 = arith.constant 0 : i32
    return %c0_i32, %c0_i32_0 : i32, i32
  }
  func.func @transform_10(%arg0: i32) -> (i32, i32) {
    %c0_i32 = arith.constant 0 : i32
    %c0_i32_0 = arith.constant 0 : i32
    %c0_i32_1 = arith.constant 0 : i32
    return %c0_i32, %c0_i32_0 : i32, i32
  }
  func.func @transform_11(%arg0: i32) -> (i32, i32) {
    %c0_i32 = arith.constant 0 : i32
    %c0_i32_0 = arith.constant 0 : i32
    %c0_i32_1 = arith.constant 0 : i32
    return %c0_i32, %c0_i32_0 : i32, i32
  }
  func.func @transform_12(%arg0: i32) -> (i32, i32) {
    %c0_i32 = arith.constant 0 : i32
    %c0_i32_0 = arith.constant 0 : i32
    %c0_i32_1 = arith.constant 0 : i32
    return %c0_i32, %c0_i32_0 : i32, i32
  }
  func.func @transform_13(%arg0: i32) -> (i32, i32) {
    %c0_i32 = arith.constant 0 : i32
    %c0_i32_0 = arith.constant 0 : i32
    %c0_i32_1 = arith.constant 0 : i32
    return %c0_i32, %c0_i32_0 : i32, i32
  }
  func.func @transform_14(%arg0: i32) -> (i32, i32) {
    %c0_i32 = arith.constant 0 : i32
    %c0_i32_0 = arith.constant 0 : i32
    %c0_i32_1 = arith.constant 0 : i32
    return %c0_i32, %c0_i32_0 : i32, i32
  }
  func.func @transform_15(%arg0: i32) -> (i32, i32) {
    %c0_i32 = arith.constant 0 : i32
    %c0_i32_0 = arith.constant 0 : i32
    return %c0_i32, %arg0 : i32, i32
  }
}

</mosaic_0001>

<bundles_post_ra>
// kernel: tpu_custom_call.1
= control target key start
LH: loop header
LB: loop body
LE: loop exit
PB: predicated region body
PF: predicated region fallthrough
CT: control target
= control target key end

     0   :  { %s4094_s0 = inlined_call_operand.vmem [shape: f32[3,256], index: 0, kind: input, shape index: {}]   ;;  %s4095_s1 = inlined_call_operand.vmem [shape: f32[1,256], index: 1, kind: input, shape index: {}]   ;;  %s4096_s2 = inlined_call_operand.vmem [shape: f32[16,3], index: 2, kind: input, shape index: {}]   ;;  %s4097_s3 = inlined_call_operand.vmem [shape: f32[16,1], index: 3, kind: input, shape index: {}]   ;;  %s4098_s4 = inlined_call_operand.vmem [shape: f32[32,16], index: 4, kind: input, shape index: {}]   ;;  %s4099_s5 = inlined_call_operand.vmem [shape: f32[32,1], index: 5, kind: input, shape index: {}]   ;;  %s4100_s6 = inlined_call_operand.vmem [shape: f32[32,1], index: 6, kind: input, shape index: {}]   ;;  %s4101_s7 = inlined_call_operand.vmem [shape: f32[32,1], index: 7, kind: input, shape index: {}]   ;;  %s4102_s8 = inlined_call_operand.vmem [shape: f32[256,32], index: 8, kind: input, shape index: {}]   ;;  %s4103_s9 = inlined_call_operand.vmem [shape: f32[256,32], index: 9, kind: input, shape index: {}]   ;;  %s4104_s10 = inlined_call_operand.vmem [shape: f32[256,1], index: 10, kind: input, shape index: {}]   ;;  %s4105_s11 = inlined_call_operand.vmem [shape: f32[256,256], index: 11, kind: input, shape index: {}]   ;;  %s4106_s12 = inlined_call_operand.vmem [shape: f32[256,1], index: 12, kind: input, shape index: {}]   ;;  %s4107_s13 = inlined_call_operand.vmem [shape: f32[1,256], index: 13, kind: input, shape index: {}]   ;;  %s4108_s14 = inlined_call_operand.<no memory space> [shape: f32[1,1], index: 14, kind: input, shape index: {}]   ;;  %s4109_s15 = inlined_call_operand.hbm [shape: f32[1,256], index: 15, kind: output, shape index: {}]  }
   0x1   :  { %v20_v0 = vstv %s4108_s14 }
   0x2   :  { %21 = vst [vmem:[#allocation2] sm:$0x1] %v20_v0 }
   0x3   :  { %22 = vsyncpa [#allocation4], 0 }
   0x4   :  { %24 = vsyncpa [#allocation4 + $0x1], 0  ;;  %s3184_s20 = smov 0   ;;  %s3186_s21 = smov 0  }
   0x5   :  { %s3188_s22 = smov 0   ;;  %s3190_s23 = smov 0  }
   0x6 LB: > { %4114 = sst [smem:[#allocation6_spill]] %s3092_s22  ;;  %s3205_s14 = sadd.s32 4294967295, %s3096_s23   ;;  %s3096_s23 = sphi %s3190_s23, %s4121_s23   ;;  %s3092_s22 = sphi %s3188_s22, %s4126_s22   ;;  %s3088_s21 = sphi %s3186_s21, %s4125_s21   ;;  %s3084_s20 = sphi %s3184_s20, %s4124_s20  }
   0x7   : > { %s2519_s24 = sadd.s32 4294967294, %s3096_s23   ;;  %s3209_s25 = sadd.s32 1, %s3096_s23  }
   0x8   : > { %4115 = sst [smem:[#allocation7_spill]] %s3209_s25  ;;  %s362_s26 = sadd.s32 1, %s3092_s22 }
   0x9   : > { %s359_s27 = ssub.s32 %s3096_s23, %s3209_s25  ;;  %p372_p0 = scmp.ne.s32.totalorder %s3092_s22, %s3088_s21 }
   0xa   : > { %p360_p1 = scmp.eq.s32.totalorder %s359_s27, 0  ;;  %p373_p2 = scmp.eq.s32.totalorder %s3205_s14, 1 }
   0xb   : > { %p378_p3 = scmp.ne.s32.totalorder %s3088_s21, %s3084_s20  ;;  %p379_p4 = scmp.eq.s32.totalorder %s2519_s24, 1 }
   0xc   : > { %s3220_s28 = scalar_select %p360_p1, %s3092_s22, %s362_s26  }
   0xd   : > { %p3222_p5 = por %p373_p2, %p372_p0  ;;  %p3226_p6 = por %p379_p4, %p378_p3 }
   0xe   : > { %4116 = sst [smem:[#allocation8_spill]] %s3220_s28  ;;  %p2522_p7 = scmp.ge.s32.totalorder %s3096_s23, 1 }
   0xf   : > { %s4118_s30 = scalar_select %p3226_p6, 1, 0 }
  0x10   : > { %p449_p8 = scmp.lt.s32.totalorder %s3096_s23, 3 }
  0x11   : > { %4119 = sst [smem:[#allocation9_spill]] %s4118_s30 }
  0x12   : > { %p450_p9 = pnand %p2522_p7, %p449_p8 }
  0x13   : > { %v508_v1 = vld [vmem:[%s4097_s3] sm:$0xff] (!%p450_p9)  ;;  %p498_p10 = scmp.lt.s32.totalorder (!%p450_p9), %s3205_s14, 1  ;;  %v3098_v3 = vmov (!%p450_p9), 0   ;;  %vm520_vm0 = vcmask (!%p450_p9), 23552   ;;  %v509_v4 = vld [vmem:[%s4097_s3 + $0x8] sm:$0xff] (!%p450_p9)  ;;  %vm527_vm1 = vcmask (!%p450_p9), 1042432  }
  0x14   : > { %453 = sbr.rel (%p450_p9) target bundleno = 1415 (0x587), region = 80  ;;  %v505_v2 = vld [vmem:[%s4096_s2] sm:$0xff] (!%p450_p9)  ;;  %3032 = vset.pattern.permute.xlu0 (!%p450_p9), %v3098_v3  ;;  %3033 = vset.pattern.permute.xlu1 (!%p450_p9), %v3098_v3  ;;  %v506_v6 = vld [vmem:[%s4096_s2 + $0x8] sm:$0xff] (!%p450_p9)  ;;  %v745_v7 = vld [vmem:[%s4101_s7 + $0x10] sm:$0xff] (!%p450_p9)  ;;  %vm636_vm2 = vcmask (!%p450_p9), 130048   ;;  %vm780_vm3 = vcmask (!%p450_p9), 1040384  }
  0x15   : > { %512 = vperm.xlu0 (!%p450_p9), %3032, %v508_v1   ;;  %2726 = vmatprep.mubr.msk.f32.mxu1 (!%p450_p9), %vm520_vm0, %v505_v2  ;;  %v612_v8 = vld [vmem:[%s4099_s5] sm:$0xff] (!%p450_p9)  ;;  %v614_v9 = vld [vmem:[%s4099_s5 + $0x10] sm:$0xff] (!%p450_p9)  ;;  %v744_v19 = vld [vmem:[%s4101_s7 + $0x8] sm:$0xff] (!%p450_p9)  ;;  %vm767_vm4 = vcmask (!%p450_p9), 7168   ;;  %vm937_vm5 = vcmask (!%p450_p9), 261120   ;;  %s496_s22 = sand.u32 (!%p450_p9), 1, %s3088_s21  }
  0x16   : > { %v1580_v10 = vld [vmem:[%s4104_s10] sm:$0xff] (!%p450_p9)  ;;  %v1582_v11 = vld [vmem:[%s4104_s10 + $0x10] sm:$0xff] (!%p450_p9)  ;;  %v746_v21 = vld [vmem:[%s4101_s7 + $0x18] sm:$0xff] (!%p450_p9)  ;;  %s2600_s17 = sshll.u32 (!%p450_p9), %s3205_s14, 4  ;;  %s2443_s27 = scalar_lea.sflag (!%p450_p9), [#allocation4], %s496_s22 }
  0x17   : > { %v1584_v12 = vld [vmem:[%s4104_s10 + $0x20] sm:$0xff] (!%p450_p9)  ;;  %v1586_v13 = vld [vmem:[%s4104_s10 + $0x30] sm:$0xff] (!%p450_p9)  ;;  %v613_v23 = vld [vmem:[%s4099_s5 + $0x8] sm:$0xff] (!%p450_p9)  ;;  %s4052_s26 = scalar_lea.hbm (!%p450_p9), %s4109_s15, %s2600_s17 }
  0x18   : > { %v1588_v14 = vld [vmem:[%s4104_s10 + $0x40] sm:$0xff] (!%p450_p9)  ;;  %v1590_v15 = vld [vmem:[%s4104_s10 + $0x50] sm:$0xff] (!%p450_p9)  ;;  %v615_v25 = vld [vmem:[%s4099_s5 + $0x18] sm:$0xff] (!%p450_p9) }
  0x19   : > { %517 = vperm.xlu0 (!%p450_p9), %3032, %v509_v4   ;;  %v1592_v16 = vld [vmem:[%s4104_s10 + $0x60] sm:$0xff] (!%p450_p9)  ;;  %v1594_v18 = vld [vmem:[%s4104_s10 + $0x70] sm:$0xff] (!%p450_p9)  ;;  %v1581_v27 = vld [vmem:[%s4104_s10 + $0x8] sm:$0xff] (!%p450_p9) }
  0x1a   : > { %v743_v17 = vld [vmem:[%s4101_s7] sm:$0xff] (!%p450_p9)  ;;  %v1598_v22 = vld [vmem:[%s4104_s10 + $0x90] sm:$0xff] (!%p450_p9)  ;;  %v1583_v29 = vld [vmem:[%s4104_s10 + $0x18] sm:$0xff] (!%p450_p9) }
  0x1b   : > { %s3240_s24 = scalar_select %p498_p10, %s3205_s14, 1  ;;  %749 = vperm.xlu1 %3033, %v743_v17   ;;  %v1596_v20 = vld [vmem:[%s4104_s10 + $0x80] sm:$0xff]  ;;  %v1602_v26 = vld [vmem:[%s4104_s10 + $0xb0] sm:$0xff]  ;;  %v1585_v31 = vld [vmem:[%s4104_s10 + $0x28] sm:$0xff] }
  0x1c   : > { %v1600_v24 = vld [vmem:[%s4104_s10 + $0xa0] sm:$0xff]  ;;  %v1606_v30 = vld [vmem:[%s4104_s10 + $0xd0] sm:$0xff]  ;;  %v1587_v33 = vld [vmem:[%s4104_s10 + $0x38] sm:$0xff]  ;;  %s3100_s14 = smov [#allocation3]  }
  0x1d   : > { %s2523_s16 = sshll.u32 %s3240_s24, 2  ;;  %759 = vperm.xlu0 %3032, %v745_v7   ;;  %v1604_v28 = vld [vmem:[%s4104_s10 + $0xc0] sm:$0xff]  ;;  %v1610_v34 = vld [vmem:[%s4104_s10 + $0xf0] sm:$0xff]  ;;  %v1589_v35 = vld [vmem:[%s4104_s10 + $0x48] sm:$0xff]  ;;  %s504_s25 = scalar_lea.vmem %s4095_s1, %s3240_s24 }
  0x1e   : > { %s501_s18 = scalar_lea.vmem %s4094_s0, %s2523_s16  ;;  %v1608_v32 = vld [vmem:[%s4104_s10 + $0xe0] sm:$0xff]  ;;  %v1591_v37 = vld [vmem:[%s4104_s10 + $0x58] sm:$0xff]  ;;  %v1918_v39 = vld [vmem:[%s4106_s12 + $0x90] sm:$0xff]  ;;  %s3038_s28 = sshll.u32 %s3100_s14, 4  ;;  %s3039_s28 = int_to_ptr.vmem [resolvable:$false] %s3038_s28 }
  0x1f   : > { %v507_v5 = vld [vmem:[%s501_s18] sm:$0x7]  ;;  %754 = vperm.xlu1 %3033, %v744_v19   ;;  %v1593_v40 = vld [vmem:[%s4104_s10 + $0x68] sm:$0xff]  ;;  %v1902_v41 = vld [vmem:[%s4106_s12 + $0x10] sm:$0xff]  ;;  %s3040_s16 = scalar_lea.vmem %s3039_s28, 32 }
  0x20   : > { %2724 = vmatprep.subr.msk.mxu1 %vm527_vm1, %v507_v5  ;;  %v1916_v36 = vld [vmem:[%s4106_s12 + $0x80] sm:$0xff]  ;;  %v1595_v42 = vld [vmem:[%s4104_s10 + $0x78] sm:$0xff]  ;;  %v1597_v44 = vld [vmem:[%s4104_s10 + $0x88] sm:$0xff] }
  0x21   : > { %2725 = vmatpush3.msk.msra.mxu1 %vm527_vm1, %v507_v5  ;;  %618 = vperm.xlu0 %3032, %v612_v8   ;;  %v1900_v38 = vld [vmem:[%s4106_s12] sm:$0xff]  ;;  %v1599_v47 = vld [vmem:[%s4104_s10 + $0x98] sm:$0xff]  ;;  %v1922_v48 = vld [vmem:[%s4106_s12 + $0xb0] sm:$0xff] }
  0x22   : > { %2727 = vmatmul.mubr.msk.f32.vlgmr.msra.gmra.mrb[0].mxu1 %vm520_vm0, %v506_v6  ;;  %v1920_v43 = vld [vmem:[%s4106_s12 + $0xa0] sm:$0xff]  ;;  %v1601_v49 = vld [vmem:[%s4104_s10 + $0xa8] sm:$0xff]  ;;  %v1906_v50 = vld [vmem:[%s4106_s12 + $0x30] sm:$0xff] }
  0x23   : > { %764 = vperm.xlu1 %3033, %v746_v21   ;;  %v608_v45 = vld [vmem:[%s4098_s4] sm:$0xff]  ;;  %v1603_v51 = vld [vmem:[%s4104_s10 + $0xb8] sm:$0xff]  ;;  %v1605_v53 = vld [vmem:[%s4104_s10 + $0xc8] sm:$0xff] }
  0x24   : > { %2733 = vmatprep.mubr.msk.f32.mxu1 %vm636_vm2, %v608_v45  ;;  %v1904_v46 = vld [vmem:[%s4106_s12 + $0x20] sm:$0xff]  ;;  %v1607_v54 = vld [vmem:[%s4104_s10 + $0xd8] sm:$0xff]  ;;  %v1609_v56 = vld [vmem:[%s4104_s10 + $0xe8] sm:$0xff] }
  0x25   : > { %628 = vperm.xlu0 %3032, %v614_v9   ;;  %v1924_v52 = vld [vmem:[%s4106_s12 + $0xc0] sm:$0xff]  ;;  %v1926_v57 = vld [vmem:[%s4106_s12 + $0xd0] sm:$0xff]  ;;  %v1611_v58 = vld [vmem:[%s4104_s10 + $0xf8] sm:$0xff] }
  0x26   : > { %v1908_v55 = vld [vmem:[%s4106_s12 + $0x40] sm:$0xff]  ;;  %v1910_v59 = vld [vmem:[%s4106_s12 + $0x50] sm:$0xff]  ;;  %v1917_v60 = vld [vmem:[%s4106_s12 + $0x88] sm:$0xff] }
  0x27   : > { %623 = vperm.xlu1 %3033, %v613_v23   ;;  %v1928_v61 = vld [vmem:[%s4106_s12 + $0xe0] sm:$0xff]  ;;  %v1901_v62 = vld [vmem:[%s4106_s12 + $0x8] sm:$0xff]  ;;  %v1919_v0 = vld [vmem:[%s4106_s12 + $0x98] sm:$0xff] }
  0x28   : > { %v1912_v63 = vld [vmem:[%s4106_s12 + $0x60] sm:$0xff]  ;;  %v1930_v1 = vld [vmem:[%s4106_s12 + $0xf0] sm:$0xff]  ;;  %v1903_v2 = vld [vmem:[%s4106_s12 + $0x18] sm:$0xff] }
  0x29   : > { %1614 = vperm.xlu0 %3032, %v1580_v10   ;;  %v1914_v3 = vld [vmem:[%s4106_s12 + $0x70] sm:$0xff]  ;;  %v1921_v4 = vld [vmem:[%s4106_s12 + $0xa8] sm:$0xff]  ;;  %v2350_v5 = vld [vmem:[#allocation2] sm:$0x1] }
  0x2a   : > { %v1905_v6 = vld [vmem:[%s4106_s12 + $0x28] sm:$0xff]  ;;  %v1923_v7 = vld [vmem:[%s4106_s12 + $0xb8] sm:$0xff] }
  0x2b   : > { %633 = vperm.xlu1 %3033, %v615_v25   ;;  %v1907_v8 = vld [vmem:[%s4106_s12 + $0x38] sm:$0xff]  ;;  %v1925_v9 = vld [vmem:[%s4106_s12 + $0xc8] sm:$0xff] }
  0x2c   : > { %v1909_v10 = vld [vmem:[%s4106_s12 + $0x48] sm:$0xff] }
  0x2d   : > { %1624 = vperm.xlu0 %3032, %v1582_v11   ;;  %v1927_v11 = vld [vmem:[%s4106_s12 + $0xd8] sm:$0xff] }
  0x2f   : > { %1619 = vperm.xlu1 %3033, %v1581_v27   ;;  %v609_v27 = vld [vmem:[%s4098_s4 + $0x8] sm:$0xff] }
  0x31   : > { %1634 = vperm.xlu0 %3032, %v1584_v12   ;;  %v1911_v12 = vld [vmem:[%s4106_s12 + $0x58] sm:$0xff] }
  0x33   : > { %1629 = vperm.xlu1 %3033, %v1583_v29   ;;  %v611_v29 = vld [vmem:[%s4098_s4 + $0x18] sm:$0xff] }
  0x35   : > { %1644 = vperm.xlu0 %3032, %v1586_v13   ;;  %v1929_v13 = vld [vmem:[%s4106_s12 + $0xe8] sm:$0xff] }
  0x37   : > { %1639 = vperm.xlu1 %3033, %v1585_v31   ;;  %v739_v31 = vld [vmem:[%s4100_s6 + $0x8] sm:$0xff] }
  0x39   : > { %1654 = vperm.xlu0 %3032, %v1588_v14   ;;  %v1913_v14 = vld [vmem:[%s4106_s12 + $0x68] sm:$0xff] }
  0x3b   : > { %1649 = vperm.xlu1 %3033, %v1587_v33   ;;  %v741_v33 = vld [vmem:[%s4100_s6 + $0x18] sm:$0xff] }
  0x3d   : > { %1664 = vperm.xlu0 %3032, %v1590_v15   ;;  %v1931_v15 = vld [vmem:[%s4106_s12 + $0xf8] sm:$0xff] }
  0x3f   : > { %1659 = vperm.xlu1 %3033, %v1589_v35  }
  0x41   : > { %1674 = vperm.xlu0 %3032, %v1592_v16   ;;  %v1915_v16 = vld [vmem:[%s4106_s12 + $0x78] sm:$0xff] }
  0x43   : > { %1669 = vperm.xlu1 %3033, %v1591_v37  }
  0x45   : > { %1684 = vperm.xlu0 %3032, %v1594_v18  }
  0x47   : > { %1679 = vperm.xlu1 %3033, %v1593_v40  }
  0x49   : > { %1694 = vperm.xlu0 %3032, %v1596_v20  }
  0x4b   : > { %1689 = vperm.xlu1 %3033, %v1595_v42  }
  0x4d   : > { %1704 = vperm.xlu0 %3032, %v1598_v22  }
  0x4f   : > { %1699 = vperm.xlu1 %3033, %v1597_v44  }
  0x51   : > { %1714 = vperm.xlu0 %3032, %v1600_v24  }
  0x53   : > { %1709 = vperm.xlu1 %3033, %v1599_v47  }
  0x55   : > { %1724 = vperm.xlu0 %3032, %v1602_v26   ;;  %v742_v26 = vld [vmem:[%s504_s25] sm:$0x1]  ;;  %s497_s25 = scalar_lea.vmem [#allocation3], %s496_s22 }
  0x56   : > { %s2455_s30 = sshll.u32 %s497_s25, 4  ;;  %s4054_s30 = int_to_ptr.vmem [resolvable:$true] %s2455_s30 }
  0x57   : > { %1719 = vperm.xlu1 %3033, %v1601_v49   ;;  %s3034_s24 = scalar_lea.vmem %s4054_s30, 16  ;;  %p3041_p0 = scmp.lt.s32.totalorder %s4054_s30, %s3039_s28 }
  0x58   : > { %p3035_p11 = scmp.ne.s32.totalorder %s4054_s30, %s3034_s24  ;;  %p3042_p1 = scmp.lt.s32.totalorder %s3040_s16, %s3034_s24 }
  0x59   : > { %1734 = vperm.xlu0 %3032, %v1604_v28   ;;  %v610_v28 = vld [vmem:[%s4098_s4 + $0x10] sm:$0xff] }
  0x5a   : > { %p3036_p12 = pnand %p3035_p11, %p3222_p5  ;;  %p3043_p2 = por %p3042_p1, %p3041_p0 }
  0x5b   : > { %1729 = vperm.xlu1 %3033, %v1603_v51  }
  0x5c   : > { %p3037_p13 = pneg %p3036_p12 }
  0x5d   : > { %1744 = vperm.xlu0 %3032, %v1606_v30   ;;  %v738_v30 = vld [vmem:[%s4100_s6] sm:$0xff] }
  0x5e   : > { %p3044_p3 = pnand %p3043_p2, %p3037_p13 }
  0x5f   : > { %1739 = vperm.xlu1 %3033, %v1605_v53  }
  0x61   : > { %1754 = vperm.xlu0 %3032, %v1608_v32   ;;  %v740_v32 = vld [vmem:[%s4100_s6 + $0x10] sm:$0xff] }
  0x63   : > { %1749 = vperm.xlu1 %3033, %v1607_v54  }
  0x65   : > { %1764 = vperm.xlu0 %3032, %v1610_v34   ;;  %v905_v34 = vld [vmem:[%s4103_s9] sm:$0xff] }
  0x67   : > { %1759 = vperm.xlu1 %3033, %v1609_v56  }
  0x69   : > { %2014 = vperm.xlu0 %3032, %v1916_v36  }
  0x6b   : > { %1769 = vperm.xlu1 %3033, %v1611_v58  }
  0x6d   : > { %1934 = vperm.xlu0 %3032, %v1900_v38  }
  0x6f   : > { %2019 = vperm.xlu1 %3033, %v1917_v60  }
  0x71   : > { %2024 = vperm.xlu0 %3032, %v1918_v39  }
  0x73   : > { %1939 = vperm.xlu1 %3033, %v1901_v62  }
  0x75   : > { %1944 = vperm.xlu0 %3032, %v1902_v41  }
  0x77   : > { %2029 = vperm.xlu1 %3033, %v1919_v0  }
  0x79   : > { %2034 = vperm.xlu0 %3032, %v1920_v43  }
  0x7b   : > { %1949 = vperm.xlu1 %3033, %v1903_v2  }
  0x7d   : > { %1954 = vperm.xlu0 %3032, %v1904_v46  }
  0x7f   : > { %2039 = vperm.xlu1 %3033, %v1921_v4  }
  0x81   : > { %2044 = vperm.xlu0 %3032, %v1922_v48  }
  0x83   : > { %1959 = vperm.xlu1 %3033, %v1905_v6  }
  0x85   : > { %1964 = vperm.xlu0 %3032, %v1906_v50  }
  0x87   : > { %2049 = vperm.xlu1 %3033, %v1923_v7   ;;  %v906_v7 = vld [vmem:[%s4103_s9 + $0x8] sm:$0xff] }
  0x89   : > { %2054 = vperm.xlu0 %3032, %v1924_v52  }
  0x8b   : > { %1969 = vperm.xlu1 %3033, %v1907_v8   ;;  %v907_v8 = vld [vmem:[%s4103_s9 + $0x10] sm:$0xff] }
  0x8d   : > { %1974 = vperm.xlu0 %3032, %v1908_v55  }
  0x8f   : > { %2059 = vperm.xlu1 %3033, %v1925_v9   ;;  %v908_v9 = vld [vmem:[%s4103_s9 + $0x18] sm:$0xff] }
  0x91   : > { %2064 = vperm.xlu0 %3032, %v1926_v57  }
  0x93   : > { %1979 = vperm.xlu1 %3033, %v1909_v10   ;;  %v909_v10 = vld [vmem:[%s4103_s9 + $0x20] sm:$0xff] }
  0x94   : > { %v513_v17 = vpop.permute.xlu0 %512 }
  0x95   : > { %1984 = vperm.xlu0 %3032, %v1910_v59  }
  0x97   : > { %2069 = vperm.xlu1 %3033, %v1927_v11   ;;  %v910_v11 = vld [vmem:[%s4103_s9 + $0x28] sm:$0xff] }
  0x98   : > { %v518_v18 = vpop.permute.xlu0 %517 }
  0x99   : > { %2074 = vperm.xlu0 %3032, %v1928_v61  }
  0x9a   : > { %v750_v35 = vpop.permute.xlu1 %749 }
  0x9b   : > { %1989 = vperm.xlu1 %3033, %v1911_v12   ;;  %v911_v12 = vld [vmem:[%s4103_s9 + $0x30] sm:$0xff] }
  0x9c   : > { %v760_v38 = vpop.permute.xlu0 %759 }
  0x9d   : > { %1994 = vperm.xlu0 %3032, %v1912_v63  }
  0x9e   : > { %v755_v36 = vpop.permute.xlu1 %754 }
  0x9f   : > { %2079 = vperm.xlu1 %3033, %v1929_v13   ;;  %v912_v13 = vld [vmem:[%s4103_s9 + $0x38] sm:$0xff] }
  0xa0   : > { %v619_v40 = vpop.permute.xlu0 %618 }
  0xa1   : > { %2084 = vperm.xlu0 %3032, %v1930_v1  }
  0xa2   : > { %v765_v37 = vpop.permute.xlu1 %764 }
  0xa3   : > { %1999 = vperm.xlu1 %3033, %v1913_v14   ;;  %v913_v14 = vld [vmem:[%s4103_s9 + $0x40] sm:$0xff] }
  0xa4   : > { %v629_v49 = vpop.permute.xlu0 %628 }
  0xa5   : > { %2004 = vperm.xlu0 %3032, %v1914_v3  }
  0xa6   : > { %v624_v39 = vpop.permute.xlu1 %623 }
  0xa7   : > { %2089 = vperm.xlu1 %3033, %v1931_v15   ;;  %v914_v15 = vld [vmem:[%s4103_s9 + $0x48] sm:$0xff] }
  0xa9   : > { %2353 = vperm.xlu0 %3032, %v2350_v5  }
  0xaa   : > { %v634_v46 = vpop.permute.xlu1 %633 }
  0xab   : > { %2009 = vperm.xlu1 %3033, %v1915_v16   ;;  %v915_v16 = vld [vmem:[%s4103_s9 + $0x50] sm:$0xff] }
  0xf5   : > { %v2728_v19 = vpop.f32.mrb[0].mxu1 }
  0xf6   : > { %v603_v20 = vadd.f32 %v2728_v19, %v518_v18  ;;  %v597_v21 = vpop.f32.mrb[1].mxu1  ;;  %v917_v18 = vld [vmem:[%s4103_s9 + $0x60] sm:$0xff]  ;;  %v918_v19 = vld [vmem:[%s4103_s9 + $0x68] sm:$0xff] }
  0xf7   : > { %v598_v22 = vadd.f32 %v597_v21, %v513_v17  ;;  %v916_v17 = vld [vmem:[%s4103_s9 + $0x58] sm:$0xff] }
  0xf8   : > { %v607_v23 = vmax.f32 %v603_v20, 0.0  ;;  %v919_v20 = vld [vmem:[%s4103_s9 + $0x70] sm:$0xff]  ;;  %v920_v21 = vld [vmem:[%s4103_s9 + $0x78] sm:$0xff] }
  0xf9   : > { %v606_v24 = vmax.f32 %v598_v22, 0.0  ;;  %v921_v22 = vld [vmem:[%s4103_s9 + $0x80] sm:$0xff] }
  0xfb   : > { %v2859_v25 = vpack.c.bf16 %v607_v23, %v606_v24  ;;  %v922_v23 = vld [vmem:[%s4103_s9 + $0x88] sm:$0xff]  ;;  %v923_v24 = vld [vmem:[%s4103_s9 + $0x90] sm:$0xff] }
  0xfd   : > { %2860 = vmatprep.subr.bf16.mxu1 %v2859_v25 }
  0xfe   : > { %2862 = vmatpush3.bf16.msra.mxu1 %v2859_v25  ;;  %v924_v25 = vld [vmem:[%s4103_s9 + $0x98] sm:$0xff] }
  0xff   : > { %2739 = vmatprep.subr.msk.mxu1 %vm780_vm3, %v742_v26 }
 0x101   : > { %2734 = vmatmul.mubr.msk.f32.vlgmr.msra.gmra.mrb[2].mxu1 %vm636_vm2, %v609_v27  ;;  %v926_v27 = vld [vmem:[%s4103_s9 + $0xa8] sm:$0xff] }
 0x102   : > { %2736 = vmatprep.mubr.msk.f32.mxu1 %vm636_vm2, %v610_v28  ;;  %2740 = vmatpush3.msk.msra.mxu1 %vm780_vm3, %v742_v26  ;;  %v925_v26 = vld [vmem:[%s4103_s9 + $0xa0] sm:$0xff]  ;;  %v927_v28 = vld [vmem:[%s4103_s9 + $0xb0] sm:$0xff] }
 0x105   : > { %2737 = vmatmul.mubr.msk.f32.gmra.mrb[4].mxu1 %vm636_vm2, %v611_v29  ;;  %v928_v29 = vld [vmem:[%s4103_s9 + $0xb8] sm:$0xff] }
 0x106   : > { %2741 = vmatprep.mubr.msk.f32.mxu1 %vm767_vm4, %v738_v30  ;;  %v929_v30 = vld [vmem:[%s4103_s9 + $0xc0] sm:$0xff] }
 0x109   : > { %2742 = vmatmul.mubr.msk.f32.vlgmr.msra.gmra.mrb[6].mxu1 %vm767_vm4, %v739_v31  ;;  %v930_v31 = vld [vmem:[%s4103_s9 + $0xc8] sm:$0xff] }
 0x10a   : > { %2744 = vmatprep.mubr.msk.f32.mxu1 %vm767_vm4, %v740_v32  ;;  %v931_v32 = vld [vmem:[%s4103_s9 + $0xd0] sm:$0xff] }
 0x10d   : > { %2745 = vmatmul.mubr.msk.f32.gmra.mrb[8].mxu1 %vm767_vm4, %v741_v33  ;;  %v932_v33 = vld [vmem:[%s4103_s9 + $0xd8] sm:$0xff] }
 0x10e   : > { %2755 = vmatprep.mubr.msk.f32.mxu1 %vm937_vm5, %v905_v34  ;;  %v933_v34 = vld [vmem:[%s4103_s9 + $0xe0] sm:$0xff] }
 0x1d4   : > { %v2735_v41 = vpop.f32.mrb[2].mxu1 }
 0x1d5   : > { %v721_v42 = vadd.f32 %v2735_v41, %v624_v39  ;;  %v715_v43 = vpop.f32.mrb[3].mxu1  ;;  %v874_v39 = vld [vmem:[%s4102_s8 + $0x8] sm:$0xff]  ;;  %v876_v41 = vld [vmem:[%s4102_s8 + $0x18] sm:$0xff] }
 0x1d6   : > { %v716_v44 = vadd.f32 %v715_v43, %v619_v40  ;;  %v875_v40 = vld [vmem:[%s4102_s8 + $0x10] sm:$0xff]  ;;  %v878_v43 = vld [vmem:[%s4102_s8 + $0x28] sm:$0xff] }
 0x1d7   : > { %v735_v45 = vmax.f32 %v721_v42, 0.0  ;;  %v877_v42 = vld [vmem:[%s4102_s8 + $0x20] sm:$0xff] }
 0x1d8   : > { %v734_v47 = vmax.f32 %v716_v44, 0.0  ;;  %v2738_v48 = vpop.f32.mrb[4].mxu1  ;;  %v879_v44 = vld [vmem:[%s4102_s8 + $0x30] sm:$0xff] }
 0x1d9   : > { %v731_v50 = vadd.f32 %v2738_v48, %v634_v46  ;;  %v725_v51 = vpop.f32.mrb[5].mxu1  ;;  %v881_v46 = vld [vmem:[%s4102_s8 + $0x40] sm:$0xff]  ;;  %v883_v48 = vld [vmem:[%s4102_s8 + $0x50] sm:$0xff] }
 0x1da   : > { %v2871_v52 = vpack.c.bf16 %v735_v45, %v734_v47  ;;  %v726_v53 = vadd.f32 %v725_v51, %v629_v49  ;;  %v880_v45 = vld [vmem:[%s4102_s8 + $0x38] sm:$0xff]  ;;  %v882_v47 = vld [vmem:[%s4102_s8 + $0x48] sm:$0xff] }
 0x1db   : > { %v737_v54 = vmax.f32 %v731_v50, 0.0  ;;  %v884_v49 = vld [vmem:[%s4102_s8 + $0x58] sm:$0xff]  ;;  %v885_v50 = vld [vmem:[%s4102_s8 + $0x60] sm:$0xff]  ;;  %v886_v51 = vld [vmem:[%s4102_s8 + $0x68] sm:$0xff] }
 0x1dc   : > { %v736_v55 = vmax.f32 %v726_v53, 0.0  ;;  %v2743_v56 = vpop.f32.mrb[6].mxu1  ;;  %v888_v53 = vld [vmem:[%s4102_s8 + $0x78] sm:$0xff] }
 0x1dd   : > { %v856_v57 = vadd.f32 %v2743_v56, %v755_v36  ;;  %v850_v58 = vpop.f32.mrb[7].mxu1  ;;  %v935_v36 = vld [vmem:[%s4103_s9 + $0xf0] sm:$0xff] }
 0x1de   : > { %v2875_v59 = vpack.c.bf16 %v737_v54, %v736_v55  ;;  %v851_v60 = vadd.f32 %v850_v58, %v750_v35  ;;  %v934_v35 = vld [vmem:[%s4103_s9 + $0xe8] sm:$0xff]  ;;  %v889_v54 = vld [vmem:[%s4102_s8 + $0x80] sm:$0xff]  ;;  %v891_v56 = vld [vmem:[%s4102_s8 + $0x90] sm:$0xff] }
 0x1df   : > { %v870_v61 = vmax.f32 %v856_v57, 0.0  ;;  %v890_v55 = vld [vmem:[%s4102_s8 + $0x88] sm:$0xff]  ;;  %v892_v57 = vld [vmem:[%s4102_s8 + $0x98] sm:$0xff]  ;;  %v893_v58 = vld [vmem:[%s4102_s8 + $0xa0] sm:$0xff] }
 0x1e0   : > { %v869_v62 = vmax.f32 %v851_v60, 0.0  ;;  %v2746_v63 = vpop.f32.mrb[8].mxu1  ;;  %v895_v60 = vld [vmem:[%s4102_s8 + $0xb0] sm:$0xff] }
 0x1e1   : > { %v866_v0 = vadd.f32 %v2746_v63, %v765_v37  ;;  %v860_v1 = vpop.f32.mrb[9].mxu1  ;;  %v936_v37 = vld [vmem:[%s4103_s9 + $0xf8] sm:$0xff]  ;;  %v898_v63 = vld [vmem:[%s4102_s8 + $0xc8] sm:$0xff] }
 0x1e2   : > { %v2863_v2 = vpack.c.bf16 %v870_v61, %v869_v62  ;;  %v861_v3 = vadd.f32 %v860_v1, %v760_v38  ;;  %v873_v38 = vld [vmem:[%s4102_s8] sm:$0xff]  ;;  %v896_v61 = vld [vmem:[%s4102_s8 + $0xb8] sm:$0xff] }
 0x1e3   : > { %v872_v4 = vmax.f32 %v866_v0, 0.0  ;;  %v897_v62 = vld [vmem:[%s4102_s8 + $0xc0] sm:$0xff]  ;;  %v899_v0 = vld [vmem:[%s4102_s8 + $0xd0] sm:$0xff]  ;;  %v900_v1 = vld [vmem:[%s4102_s8 + $0xd8] sm:$0xff] }
 0x1e4   : > { %v871_v5 = vmax.f32 %v861_v3, 0.0  ;;  %2864 = vmatprep.subr.bf16.mxu1 %v2863_v2  ;;  %v902_v3 = vld [vmem:[%s4102_s8 + $0xe8] sm:$0xff] }
 0x1e5   : > { %2866 = vmatpush3.bf16.msra.mxu1 %v2863_v2  ;;  %v901_v2 = vld [vmem:[%s4102_s8 + $0xe0] sm:$0xff] }
 0x1e6   : > { %v2867_v6 = vpack.c.bf16 %v872_v4, %v871_v5  ;;  %v903_v4 = vld [vmem:[%s4102_s8 + $0xf0] sm:$0xff]  ;;  %v904_v5 = vld [vmem:[%s4102_s8 + $0xf8] sm:$0xff] }
 0x1e8   : > { %2868 = vmatprep.subr.bf16.mxu1 %v2867_v6 }
 0x1e9   : > { %2870 = vmatpush3.bf16.msra.mxu1 %v2867_v6  ;;  %v3099_v6 = vmov 0.0|0.0  }
 0x1ea   : > { %2872 = vmatprep.subr.bf16.mxu1 %v2871_v52  ;;  %2879 = vmatprep.subr.bf16.mxu0 %v3099_v6 }
 0x1ec   : > { %2756 = vmatmul.mubr.msk.f32.vlgmr.msra.gmra.mrb[10].mxu1 %vm937_vm5, %v906_v7  ;;  %v1837_v7 = vld [vmem:[%s4105_s11 + $0x8] sm:$0xff] }
 0x1ed   : > { %2874 = vmatpush3.bf16.msra.mxu1 %v2871_v52  ;;  %2758 = vmatprep.mubr.msk.f32.mxu1 %vm937_vm5, %v907_v8  ;;  %v887_v52 = vld [vmem:[%s4102_s8 + $0x70] sm:$0xff]  ;;  %v1620_v8 = vpop.permute.xlu1 %1619 }
 0x1ee   : > { %2876 = vmatprep.subr.bf16.mxu1 %v2875_v59  ;;  %2156 = vmatprep.mubr.f32.mxu0 %v1837_v7 }
 0x1f0   : > { %2759 = vmatmul.mubr.msk.f32.gmra.mrb[12].mxu1 %vm937_vm5, %v908_v9  ;;  %v1615_v9 = vpop.permute.xlu0 %1614 }
 0x1f1   : > { %2878 = vmatpush3.bf16.msra.mxu1 %v2875_v59  ;;  %2761 = vmatprep.mubr.msk.f32.mxu1 %vm937_vm5, %v909_v10  ;;  %v894_v59 = vld [vmem:[%s4102_s8 + $0xa8] sm:$0xff]  ;;  %v1630_v10 = vpop.permute.xlu1 %1629 }
 0x1f4   : > { %2762 = vmatmul.mubr.msk.f32.gmra.mrb[14].mxu1 %vm937_vm5, %v910_v11  ;;  %v1625_v11 = vpop.permute.xlu0 %1624 }
 0x1f5   : > { %2764 = vmatprep.mubr.msk.f32.mxu1 %vm937_vm5, %v911_v12  ;;  %v1640_v12 = vpop.permute.xlu1 %1639 }
 0x1f8   : > { %2765 = vmatmul.mubr.msk.f32.gmra.mrb[16].mxu1 %vm937_vm5, %v912_v13  ;;  %v1635_v13 = vpop.permute.xlu0 %1634 }
 0x1f9   : > { %2767 = vmatprep.mubr.msk.f32.mxu1 %vm937_vm5, %v913_v14  ;;  %v1650_v14 = vpop.permute.xlu1 %1649 }
 0x1fc   : > { %2768 = vmatmul.mubr.msk.f32.gmra.mrb[18].mxu1 %vm937_vm5, %v914_v15  ;;  %v1645_v15 = vpop.permute.xlu0 %1644 }
 0x1fd   : > { %2770 = vmatprep.mubr.msk.f32.mxu1 %vm937_vm5, %v915_v16  ;;  %v1660_v16 = vpop.permute.xlu1 %1659 }
 0x200   : > { %2771 = vmatmul.mubr.msk.f32.gmra.mrb[20].mxu1 %vm937_vm5, %v916_v17  ;;  %v1655_v17 = vpop.permute.xlu0 %1654 }
 0x201   : > { %2773 = vmatprep.mubr.msk.f32.mxu1 %vm937_vm5, %v917_v18  ;;  %v1670_v18 = vpop.permute.xlu1 %1669 }
 0x204   : > { %2774 = vmatmul.mubr.msk.f32.gmra.mrb[22].mxu1 %vm937_vm5, %v918_v19 }
 0x205   : > { %2776 = vmatprep.mubr.msk.f32.mxu1 %vm937_vm5, %v919_v20  ;;  %v1665_v20 = vpop.permute.xlu0 %1664 }
 0x208   : > { %2777 = vmatmul.mubr.msk.f32.gmra.mrb[24].mxu1 %vm937_vm5, %v920_v21 }
 0x209   : > { %2779 = vmatprep.mubr.msk.f32.mxu1 %vm937_vm5, %v921_v22 }
 0x20c   : > { %2780 = vmatmul.mubr.msk.f32.gmra.mrb[26].mxu1 %vm937_vm5, %v922_v23 }
 0x20d   : > { %2782 = vmatprep.mubr.msk.f32.mxu1 %vm937_vm5, %v923_v24 }
 0x210   : > { %2783 = vmatmul.mubr.msk.f32.gmra.mrb[28].mxu1 %vm937_vm5, %v924_v25 }
 0x211   : > { %2785 = vmatprep.mubr.msk.f32.mxu1 %vm937_vm5, %v925_v26 }
 0x214   : > { %2786 = vmatmul.mubr.msk.f32.gmra.mrb[30].mxu1 %vm937_vm5, %v926_v27 }
 0x215   : > { %2788 = vmatprep.mubr.msk.f32.mxu1 %vm937_vm5, %v927_v28 }
 0x218   : > { %2789 = vmatmul.mubr.msk.f32.gmra.mrb[32].mxu1 %vm937_vm5, %v928_v29  ;;  %v1680_v29 = vpop.permute.xlu1 %1679 }
 0x219   : > { %2791 = vmatprep.mubr.msk.f32.mxu1 %vm937_vm5, %v929_v30 }
 0x21c   : > { %2792 = vmatmul.mubr.msk.f32.gmra.mrb[34].mxu1 %vm937_vm5, %v930_v31 }
 0x21d   : > { %2794 = vmatprep.mubr.msk.f32.mxu1 %vm937_vm5, %v931_v32  ;;  %v1675_v32 = vpop.permute.xlu0 %1674 }
 0x220   : > { %2795 = vmatmul.mubr.msk.f32.gmra.mrb[36].mxu1 %vm937_vm5, %v932_v33 }
 0x221   : > { %2797 = vmatprep.mubr.msk.f32.mxu1 %vm937_vm5, %v933_v34 }
 0x224   : > { %2798 = vmatmul.mubr.msk.f32.gmra.mrb[38].mxu1 %vm937_vm5, %v934_v35 }
 0x225   : > { %2800 = vmatprep.mubr.msk.f32.mxu1 %vm937_vm5, %v935_v36 }
 0x228   : > { %2801 = vmatmul.mubr.msk.f32.gmra.mrb[40].mxu1 %vm937_vm5, %v936_v37 }
 0x229   : > { %2811 = vmatprep.mubr.msk.f32.mxu1 %vm937_vm5, %v873_v38 }
 0x22c   : > { %2812 = vmatmul.mubr.msk.f32.vlgmr.msra.gmra.mrb[10].mxu1 %vm937_vm5, %v874_v39 }
 0x22d   : > { %2814 = vmatprep.mubr.msk.f32.mxu1 %vm937_vm5, %v875_v40 }
 0x230   : > { %2815 = vmatmul.mubr.msk.f32.gmra.mrb[12].mxu1 %vm937_vm5, %v876_v41  ;;  %v1690_v41 = vpop.permute.xlu1 %1689 }
 0x231   : > { %2817 = vmatprep.mubr.msk.f32.mxu1 %vm937_vm5, %v877_v42 }
 0x234   : > { %2818 = vmatmul.mubr.msk.f32.gmra.mrb[14].mxu1 %vm937_vm5, %v878_v43 }
 0x235   : > { %2820 = vmatprep.mubr.msk.f32.mxu1 %vm937_vm5, %v879_v44  ;;  %v1685_v44 = vpop.permute.xlu0 %1684 }
 0x238   : > { %2821 = vmatmul.mubr.msk.f32.gmra.mrb[16].mxu1 %vm937_vm5, %v880_v45 }
 0x239   : > { %2823 = vmatprep.mubr.msk.f32.mxu1 %vm937_vm5, %v881_v46 }
 0x23c   : > { %2824 = vmatmul.mubr.msk.f32.gmra.mrb[18].mxu1 %vm937_vm5, %v882_v47 }
 0x23d   : > { %2826 = vmatprep.mubr.msk.f32.mxu1 %vm937_vm5, %v883_v48 }
 0x240   : > { %2827 = vmatmul.mubr.msk.f32.gmra.mrb[20].mxu1 %vm937_vm5, %v884_v49 }
 0x241   : > { %2829 = vmatprep.mubr.msk.f32.mxu1 %vm937_vm5, %v885_v50 }
 0x244   : > { %2830 = vmatmul.mubr.msk.f32.gmra.mrb[22].mxu1 %vm937_vm5, %v886_v51 }
 0x245   : > { %2832 = vmatprep.mubr.msk.f32.mxu1 %vm937_vm5, %v887_v52 }
 0x248   : > { %2833 = vmatmul.mubr.msk.f32.gmra.mrb[24].mxu1 %vm937_vm5, %v888_v53 }
 0x249   : > { %2835 = vmatprep.mubr.msk.f32.mxu1 %vm937_vm5, %v889_v54  ;;  %v1700_v54 = vpop.permute.xlu1 %1699 }
 0x24c   : > { %2836 = vmatmul.mubr.msk.f32.gmra.mrb[26].mxu1 %vm937_vm5, %v890_v55 }
 0x24d   : > { %2838 = vmatprep.mubr.msk.f32.mxu1 %vm937_vm5, %v891_v56 }
 0x250   : > { %2839 = vmatmul.mubr.msk.f32.gmra.mrb[28].mxu1 %vm937_vm5, %v892_v57  ;;  %v1695_v57 = vpop.permute.xlu0 %1694 }
 0x251   : > { %2841 = vmatprep.mubr.msk.f32.mxu1 %vm937_vm5, %v893_v58 }
 0x254   : > { %2842 = vmatmul.mubr.msk.f32.gmra.mrb[30].mxu1 %vm937_vm5, %v894_v59 }
 0x255   : > { %2844 = vmatprep.mubr.msk.f32.mxu1 %vm937_vm5, %v895_v60 }
 0x258   : > { %2845 = vmatmul.mubr.msk.f32.gmra.mrb[32].mxu1 %vm937_vm5, %v896_v61 }
 0x259   : > { %2847 = vmatprep.mubr.msk.f32.mxu1 %vm937_vm5, %v897_v62 }
 0x25c   : > { %2848 = vmatmul.mubr.msk.f32.gmra.mrb[34].mxu1 %vm937_vm5, %v898_v63 }
 0x25d   : > { %2850 = vmatprep.mubr.msk.f32.mxu1 %vm937_vm5, %v899_v0 }
 0x260   : > { %2851 = vmatmul.mubr.msk.f32.gmra.mrb[36].mxu1 %vm937_vm5, %v900_v1 }
 0x261   : > { %2853 = vmatprep.mubr.msk.f32.mxu1 %vm937_vm5, %v901_v2  ;;  %v1710_v2 = vpop.permute.xlu1 %1709 }
 0x264   : > { %2854 = vmatmul.mubr.msk.f32.gmra.mrb[38].mxu1 %vm937_vm5, %v902_v3 }
 0x265   : > { %2856 = vmatprep.mubr.msk.f32.mxu1 %vm937_vm5, %v903_v4 }
 0x268   : > { %2857 = vmatmul.mubr.msk.f32.gmra.mrb[40].mxu1 %vm937_vm5, %v904_v5  ;;  %v1705_v5 = vpop.permute.xlu0 %1704 }
 0x2ff   : > { %v2813_v19 = vpop.f32.mrb[10].mxu1 }
 0x300   : > { %v1773_v21 = vadd.f32 %v2813_v19, %v1620_v8  ;;  %v1421_v22 = vpop.f32.mrb[11].mxu1  ;;  %v1715_v19 = vpop.permute.xlu0 %1714 }
 0x301   : > { %v1772_v23 = vadd.f32 %v1615_v9, %v1421_v22 }
 0x302   : > { %v1805_v24 = vmax.f32 %v1773_v21, 0.0 }
 0x303   : > { %v1804_v25 = vmax.f32 %v1772_v23, 0.0  ;;  %v2816_v26 = vpop.f32.mrb[12].mxu1 }
 0x304   : > { %v1775_v27 = vadd.f32 %v2816_v26, %v1630_v10  ;;  %v1431_v28 = vpop.f32.mrb[13].mxu1 }
 0x305   : > { %v1774_v30 = vadd.f32 %v1625_v11, %v1431_v28  ;;  %v2880_v31 = vpack.c.bf16 %v1805_v24, %v1804_v25 }
 0x306   : > { %v1807_v33 = vmax.f32 %v1775_v27, 0.0 }
 0x307   : > { %v1806_v34 = vmax.f32 %v1774_v30, 0.0  ;;  %v2819_v35 = vpop.f32.mrb[14].mxu1  ;;  %2881 = vmatpush1.bf16.msra.mxu0 %v2880_v31  ;;  %v1725_v31 = vpop.permute.xlu0 %1724 }
 0x308   : > { %v1777_v36 = vadd.f32 %v2819_v35, %v1640_v12  ;;  %v1441_v37 = vpop.f32.mrb[15].mxu1  ;;  %2882 = vmatprep.subr.bf16.mxu0 %v3099_v6 }
 0x309   : > { %v2883_v38 = vpack.c.bf16 %v1807_v33, %v1806_v34  ;;  %v1776_v39 = vadd.f32 %v1635_v13, %v1441_v37 }
 0x30a   : > { %v1809_v40 = vmax.f32 %v1777_v36, 0.0 }
 0x30b   : > { %v1808_v42 = vmax.f32 %v1776_v39, 0.0  ;;  %v2822_v43 = vpop.f32.mrb[16].mxu1  ;;  %2884 = vmatpush1.bf16.msra.mxu0 %v2883_v38 }
 0x30c   : > { %v1779_v45 = vadd.f32 %v2822_v43, %v1650_v14  ;;  %v1451_v46 = vpop.f32.mrb[17].mxu1  ;;  %2885 = vmatprep.subr.bf16.mxu0 %v3099_v6 }
 0x30d   : > { %v2886_v47 = vpack.c.bf16 %v1809_v40, %v1808_v42  ;;  %v1778_v48 = vadd.f32 %v1645_v15, %v1451_v46 }
 0x30e   : > { %v1811_v49 = vmax.f32 %v1779_v45, 0.0 }
 0x30f   : > { %v1810_v50 = vmax.f32 %v1778_v48, 0.0  ;;  %v2825_v51 = vpop.f32.mrb[18].mxu1  ;;  %2887 = vmatpush1.bf16.msra.mxu0 %v2886_v47 }
 0x310   : > { %v1781_v52 = vadd.f32 %v2825_v51, %v1660_v16  ;;  %v1461_v53 = vpop.f32.mrb[19].mxu1  ;;  %2888 = vmatprep.subr.bf16.mxu0 %v3099_v6  ;;  %v1720_v16 = vpop.permute.xlu1 %1719 }
 0x311   : > { %v2889_v55 = vpack.c.bf16 %v1811_v49, %v1810_v50  ;;  %v1780_v56 = vadd.f32 %v1655_v17, %v1461_v53 }
 0x312   : > { %v1813_v58 = vmax.f32 %v1781_v52, 0.0 }
 0x313   : > { %v1812_v59 = vmax.f32 %v1780_v56, 0.0  ;;  %v2828_v60 = vpop.f32.mrb[20].mxu1  ;;  %2890 = vmatpush1.bf16.msra.mxu0 %v2889_v55 }
 0x314   : > { %v1783_v61 = vadd.f32 %v2828_v60, %v1670_v18  ;;  %v1471_v62 = vpop.f32.mrb[21].mxu1  ;;  %2891 = vmatprep.subr.bf16.mxu0 %v3099_v6  ;;  %v1730_v28 = vpop.permute.xlu1 %1729 }
 0x315   : > { %v2892_v63 = vpack.c.bf16 %v1813_v58, %v1812_v59  ;;  %v1782_v0 = vadd.f32 %v1665_v20, %v1471_v62 }
 0x316   : > { %v1815_v1 = vmax.f32 %v1783_v61, 0.0 }
 0x317   : > { %v1814_v3 = vmax.f32 %v1782_v0, 0.0  ;;  %v2831_v4 = vpop.f32.mrb[22].mxu1  ;;  %2893 = vmatpush1.bf16.msra.mxu0 %v2892_v63 }
 0x318   : > { %v1785_v7 = vadd.f32 %v2831_v4, %v1680_v29  ;;  %v1481_v8 = vpop.f32.mrb[23].mxu1  ;;  %2894 = vmatprep.subr.bf16.mxu0 %v3099_v6 }
 0x319   : > { %v2895_v9 = vpack.c.bf16 %v1815_v1, %v1814_v3  ;;  %v1784_v10 = vadd.f32 %v1675_v32, %v1481_v8 }
 0x31a   : > { %v1817_v11 = vmax.f32 %v1785_v7, 0.0 }
 0x31b   : > { %v1816_v12 = vmax.f32 %v1784_v10, 0.0  ;;  %v2834_v13 = vpop.f32.mrb[24].mxu1  ;;  %2896 = vmatpush1.bf16.msra.mxu0 %v2895_v9 }
 0x31c   : > { %v1787_v14 = vadd.f32 %v2834_v13, %v1690_v41  ;;  %v1491_v15 = vpop.f32.mrb[25].mxu1  ;;  %2897 = vmatprep.subr.bf16.mxu0 %v3099_v6  ;;  %v1740_v41 = vpop.permute.xlu1 %1739 }
 0x31d   : > { %v2898_v17 = vpack.c.bf16 %v1817_v11, %v1816_v12  ;;  %v1786_v18 = vadd.f32 %v1685_v44, %v1491_v15  ;;  %v1735_v44 = vpop.permute.xlu0 %1734 }
 0x31e   : > { %v1819_v20 = vmax.f32 %v1787_v14, 0.0 }
 0x31f   : > { %v1818_v21 = vmax.f32 %v1786_v18, 0.0  ;;  %v2837_v22 = vpop.f32.mrb[26].mxu1  ;;  %2899 = vmatpush1.bf16.msra.mxu0 %v2898_v17 }
 0x320   : > { %v1789_v23 = vadd.f32 %v2837_v22, %v1700_v54  ;;  %v1501_v24 = vpop.f32.mrb[27].mxu1  ;;  %2900 = vmatprep.subr.bf16.mxu0 %v3099_v6  ;;  %v1750_v53 = vpop.permute.xlu1 %1749 }
 0x321   : > { %v2901_v25 = vpack.c.bf16 %v1819_v20, %v1818_v21  ;;  %v1788_v26 = vadd.f32 %v1695_v57, %v1501_v24  ;;  %v1745_v56 = vpop.permute.xlu0 %1744 }
 0x322   : > { %v1821_v27 = vmax.f32 %v1789_v23, 0.0 }
 0x323   : > { %v1820_v29 = vmax.f32 %v1788_v26, 0.0  ;;  %v2840_v30 = vpop.f32.mrb[28].mxu1  ;;  %2902 = vmatpush1.bf16.msra.mxu0 %v2901_v25  ;;  %v1836_v26 = vld [vmem:[%s4105_s11] sm:$0xff] }
 0x324   : > { %v1791_v32 = vadd.f32 %v2840_v30, %v1710_v2  ;;  %v1511_v33 = vpop.f32.mrb[29].mxu1  ;;  %2903 = vmatprep.subr.bf16.mxu0 %v3099_v6  ;;  %v1760_v2 = vpop.permute.xlu1 %1759  ;;  %v1843_v30 = vld [vmem:[%s4105_s11 + $0x38] sm:$0xff] }
 0x325   : > { %v2904_v34 = vpack.c.bf16 %v1821_v27, %v1820_v29  ;;  %v1790_v35 = vadd.f32 %v1705_v5, %v1511_v33  ;;  %v1755_v5 = vpop.permute.xlu0 %1754  ;;  %v1839_v27 = vld [vmem:[%s4105_s11 + $0x18] sm:$0xff]  ;;  %v1840_v29 = vld [vmem:[%s4105_s11 + $0x20] sm:$0xff] }
 0x326   : > { %v1823_v36 = vmax.f32 %v1791_v32, 0.0  ;;  %v1845_v32 = vld [vmem:[%s4105_s11 + $0x48] sm:$0xff]  ;;  %v1844_v33 = vld [vmem:[%s4105_s11 + $0x40] sm:$0xff] }
 0x327   : > { %v1822_v37 = vmax.f32 %v1790_v35, 0.0  ;;  %v2843_v38 = vpop.f32.mrb[30].mxu1  ;;  %2905 = vmatpush1.bf16.msra.mxu0 %v2904_v34  ;;  %v1847_v34 = vld [vmem:[%s4105_s11 + $0x58] sm:$0xff]  ;;  %v1846_v35 = vld [vmem:[%s4105_s11 + $0x50] sm:$0xff] }
 0x328   : > { %v1793_v39 = vadd.f32 %v2843_v38, %v1720_v16  ;;  %v1521_v40 = vpop.f32.mrb[31].mxu1  ;;  %2906 = vmatprep.subr.bf16.mxu0 %v3099_v6  ;;  %v1770_v15 = vpop.permute.xlu1 %1769  ;;  %v1851_v38 = vld [vmem:[%s4105_s11 + $0x78] sm:$0xff] }
 0x329   : > { %v2907_v42 = vpack.c.bf16 %v1823_v36, %v1822_v37  ;;  %v1792_v43 = vadd.f32 %v1715_v19, %v1521_v40  ;;  %v1765_v18 = vpop.permute.xlu0 %1764  ;;  %v1849_v36 = vld [vmem:[%s4105_s11 + $0x68] sm:$0xff]  ;;  %v1848_v37 = vld [vmem:[%s4105_s11 + $0x60] sm:$0xff] }
 0x32a   : > { %v1825_v45 = vmax.f32 %v1793_v39, 0.0  ;;  %v1850_v39 = vld [vmem:[%s4105_s11 + $0x70] sm:$0xff]  ;;  %v1853_v40 = vld [vmem:[%s4105_s11 + $0x88] sm:$0xff] }
 0x32b   : > { %v1824_v46 = vmax.f32 %v1792_v43, 0.0  ;;  %v2846_v47 = vpop.f32.mrb[32].mxu1  ;;  %2908 = vmatpush1.bf16.msra.mxu0 %v2907_v42  ;;  %v1855_v42 = vld [vmem:[%s4105_s11 + $0x98] sm:$0xff]  ;;  %v1854_v43 = vld [vmem:[%s4105_s11 + $0x90] sm:$0xff] }
 0x32c   : > { %v1795_v48 = vadd.f32 %v2846_v47, %v1730_v28  ;;  %v1531_v49 = vpop.f32.mrb[33].mxu1  ;;  %2909 = vmatprep.subr.bf16.mxu0 %v3099_v6  ;;  %v1838_v28 = vld [vmem:[%s4105_s11 + $0x10] sm:$0xff] }
 0x32d   : > { %v2910_v50 = vpack.c.bf16 %v1825_v45, %v1824_v46  ;;  %v1794_v51 = vadd.f32 %v1725_v31, %v1531_v49  ;;  %v1842_v31 = vld [vmem:[%s4105_s11 + $0x30] sm:$0xff]  ;;  %v1856_v45 = vld [vmem:[%s4105_s11 + $0xa0] sm:$0xff]  ;;  %v1859_v46 = vld [vmem:[%s4105_s11 + $0xb8] sm:$0xff] }
 0x32e   : > { %v1827_v52 = vmax.f32 %v1795_v48, 0.0  ;;  %v1858_v47 = vld [vmem:[%s4105_s11 + $0xb0] sm:$0xff]  ;;  %v1861_v48 = vld [vmem:[%s4105_s11 + $0xc8] sm:$0xff]  ;;  %v1860_v49 = vld [vmem:[%s4105_s11 + $0xc0] sm:$0xff] }
 0x32f   : > { %v1826_v54 = vmax.f32 %v1794_v51, 0.0  ;;  %v2849_v55 = vpop.f32.mrb[34].mxu1  ;;  %2911 = vmatpush1.bf16.msra.mxu0 %v2910_v50  ;;  %v1863_v50 = vld [vmem:[%s4105_s11 + $0xd8] sm:$0xff]  ;;  %v1862_v51 = vld [vmem:[%s4105_s11 + $0xd0] sm:$0xff] }
 0x330   : > { %v1797_v57 = vadd.f32 %v2849_v55, %v1740_v41  ;;  %v1541_v58 = vpop.f32.mrb[35].mxu1  ;;  %2912 = vmatprep.subr.bf16.mxu0 %v3099_v6  ;;  %v1852_v41 = vld [vmem:[%s4105_s11 + $0x80] sm:$0xff]  ;;  %v1866_v55 = vld [vmem:[%s4105_s11 + $0xf0] sm:$0xff] }
 0x331   : > { %v2913_v59 = vpack.c.bf16 %v1827_v52, %v1826_v54  ;;  %v1796_v60 = vadd.f32 %v1735_v44, %v1541_v58  ;;  %v1857_v44 = vld [vmem:[%s4105_s11 + $0xa8] sm:$0xff]  ;;  %v1867_v54 = vld [vmem:[%s4105_s11 + $0xf8] sm:$0xff] }
 0x332   : > { %v1829_v61 = vmax.f32 %v1797_v57, 0.0  ;;  %v1865_v52 = vld [vmem:[%s4105_s11 + $0xe8] sm:$0xff]  ;;  %v1868_v57 = vld [vmem:[%s4105_s11 + $0x100] sm:$0xff]  ;;  %v1871_v58 = vld [vmem:[%s4105_s11 + $0x118] sm:$0xff] }
 0x333   : > { %v1828_v62 = vmax.f32 %v1796_v60, 0.0  ;;  %v2852_v63 = vpop.f32.mrb[36].mxu1  ;;  %2914 = vmatpush1.bf16.msra.mxu0 %v2913_v59  ;;  %v1870_v59 = vld [vmem:[%s4105_s11 + $0x110] sm:$0xff]  ;;  %v1873_v60 = vld [vmem:[%s4105_s11 + $0x128] sm:$0xff] }
 0x334   : > { %v1799_v0 = vadd.f32 %v2852_v63, %v1750_v53  ;;  %v1551_v1 = vpop.f32.mrb[37].mxu1  ;;  %2915 = vmatprep.subr.bf16.mxu0 %v3099_v6  ;;  %v1864_v53 = vld [vmem:[%s4105_s11 + $0xe0] sm:$0xff]  ;;  %v1874_v63 = vld [vmem:[%s4105_s11 + $0x130] sm:$0xff] }
 0x335   : > { %v2916_v3 = vpack.c.bf16 %v1829_v61, %v1828_v62  ;;  %v1798_v4 = vadd.f32 %v1745_v56, %v1551_v1  ;;  %v1869_v56 = vld [vmem:[%s4105_s11 + $0x108] sm:$0xff]  ;;  %v1872_v61 = vld [vmem:[%s4105_s11 + $0x120] sm:$0xff]  ;;  %v1875_v62 = vld [vmem:[%s4105_s11 + $0x138] sm:$0xff] }
 0x336   : > { %v1831_v7 = vmax.f32 %v1799_v0, 0.0  ;;  %v1877_v0 = vld [vmem:[%s4105_s11 + $0x148] sm:$0xff]  ;;  %v1876_v1 = vld [vmem:[%s4105_s11 + $0x140] sm:$0xff] }
 0x337   : > { %v1830_v8 = vmax.f32 %v1798_v4, 0.0  ;;  %v2855_v9 = vpop.f32.mrb[38].mxu1  ;;  %2917 = vmatpush1.bf16.msra.mxu0 %v2916_v3  ;;  %v1878_v3 = vld [vmem:[%s4105_s11 + $0x150] sm:$0xff]  ;;  %v1881_v4 = vld [vmem:[%s4105_s11 + $0x168] sm:$0xff] }
 0x338   : > { %v1801_v10 = vadd.f32 %v2855_v9, %v1760_v2  ;;  %v1561_v11 = vpop.f32.mrb[39].mxu1  ;;  %2918 = vmatprep.subr.bf16.mxu0 %v3099_v6  ;;  %v1879_v2 = vld [vmem:[%s4105_s11 + $0x158] sm:$0xff]  ;;  %v1885_v9 = vld [vmem:[%s4105_s11 + $0x188] sm:$0xff] }
 0x339   : > { %v2919_v12 = vpack.c.bf16 %v1831_v7, %v1830_v8  ;;  %v1800_v13 = vadd.f32 %v1755_v5, %v1561_v11  ;;  %v1880_v5 = vld [vmem:[%s4105_s11 + $0x160] sm:$0xff]  ;;  %v1883_v7 = vld [vmem:[%s4105_s11 + $0x178] sm:$0xff]  ;;  %v1882_v8 = vld [vmem:[%s4105_s11 + $0x170] sm:$0xff] }
 0x33a   : > { %v1833_v14 = vmax.f32 %v1801_v10, 0.0  ;;  %v1884_v10 = vld [vmem:[%s4105_s11 + $0x180] sm:$0xff]  ;;  %v1887_v11 = vld [vmem:[%s4105_s11 + $0x198] sm:$0xff] }
 0x33b   : > { %v1832_v16 = vmax.f32 %v1800_v13, 0.0  ;;  %v2858_v17 = vpop.f32.mrb[40].mxu1  ;;  %2920 = vmatpush1.bf16.msra.mxu0 %v2919_v12  ;;  %v1886_v12 = vld [vmem:[%s4105_s11 + $0x190] sm:$0xff]  ;;  %v1889_v13 = vld [vmem:[%s4105_s11 + $0x1a8] sm:$0xff] }
 0x33c   : > { %v1803_v19 = vadd.f32 %v2858_v17, %v1770_v15  ;;  %v1571_v20 = vpop.f32.mrb[41].mxu1  ;;  %2921 = vmatprep.subr.bf16.mxu0 %v3099_v6  ;;  %v1891_v15 = vld [vmem:[%s4105_s11 + $0x1b8] sm:$0xff]  ;;  %v1893_v17 = vld [vmem:[%s4105_s11 + $0x1c8] sm:$0xff] }
 0x33d   : > { %v2922_v21 = vpack.c.bf16 %v1833_v14, %v1832_v16  ;;  %v1802_v22 = vadd.f32 %v1765_v18, %v1571_v20  ;;  %v1888_v14 = vld [vmem:[%s4105_s11 + $0x1a0] sm:$0xff]  ;;  %v1890_v16 = vld [vmem:[%s4105_s11 + $0x1b0] sm:$0xff] }
 0x33e   : > { %v1835_v23 = vmax.f32 %v1803_v19, 0.0  ;;  %v1892_v18 = vld [vmem:[%s4105_s11 + $0x1c0] sm:$0xff]  ;;  %v1895_v19 = vld [vmem:[%s4105_s11 + $0x1d8] sm:$0xff]  ;;  %v1894_v20 = vld [vmem:[%s4105_s11 + $0x1d0] sm:$0xff] }
 0x33f   : > { %v1834_v24 = vmax.f32 %v1802_v22, 0.0  ;;  %2923 = vmatpush1.bf16.msra.mxu0 %v2922_v21  ;;  %v1897_v21 = vld [vmem:[%s4105_s11 + $0x1e8] sm:$0xff]  ;;  %v1896_v22 = vld [vmem:[%s4105_s11 + $0x1e0] sm:$0xff] }
 0x340   : > { %2924 = vmatprep.subr.bf16.mxu0 %v3099_v6  ;;  %v1841_v6 = vld [vmem:[%s4105_s11 + $0x28] sm:$0xff] }
 0x341   : > { %v2925_v25 = vpack.c.bf16 %v1835_v23, %v1834_v24  ;;  %v1899_v23 = vld [vmem:[%s4105_s11 + $0x1f8] sm:$0xff]  ;;  %v1898_v24 = vld [vmem:[%s4105_s11 + $0x1f0] sm:$0xff] }
 0x343   : > { %2926 = vmatpush1.bf16.msra.mxu0 %v2925_v25  ;;  %v3964_v25 = vpop.permute.xlu0 %2014 }
 0x346   : > { %2157 = vmatmul.mubr.f32.vlgmr.msra.gmra.mrb[0].mxu0 %v1836_v26  ;;  %v3966_v26 = vpop.permute.xlu1 %2019 }
 0x347   : > { %2161 = vmatprep.mubr.f32.mxu0 %v1839_v27  ;;  %v1935_v27 = vpop.permute.xlu0 %1934 }
 0x34a   : > { %2162 = vmatmul.mubr.f32.gmra.mrb[2].mxu0 %v1838_v28  ;;  %v1940_v28 = vpop.permute.xlu1 %1939 }
 0x34b   : > { %2166 = vmatprep.mubr.f32.mxu0 %v1841_v6  ;;  %v3968_v6 = vpop.permute.xlu0 %2024 }
 0x34e   : > { %2167 = vmatmul.mubr.f32.gmra.mrb[4].mxu0 %v1840_v29  ;;  %v3970_v29 = vpop.permute.xlu1 %2029 }
 0x34f   : > { %2171 = vmatprep.mubr.f32.mxu0 %v1843_v30  ;;  %v1945_v30 = vpop.permute.xlu0 %1944 }
 0x352   : > { %2172 = vmatmul.mubr.f32.gmra.mrb[6].mxu0 %v1842_v31  ;;  %v1950_v31 = vpop.permute.xlu1 %1949 }
 0x353   : > { %2176 = vmatprep.mubr.f32.mxu0 %v1845_v32  ;;  %v3972_v32 = vpop.permute.xlu0 %2034 }
 0x356   : > { %2177 = vmatmul.mubr.f32.gmra.mrb[8].mxu0 %v1844_v33  ;;  %v3974_v33 = vpop.permute.xlu1 %2039 }
 0x357   : > { %2181 = vmatprep.mubr.f32.mxu0 %v1847_v34  ;;  %v2356_v34 = vlaneseq }
 0x35a   : > { %2182 = vmatmul.mubr.f32.gmra.mrb[10].mxu0 %v1846_v35  ;;  %v1955_v35 = vpop.permute.xlu0 %1954 }
 0x35b   : > { %2186 = vmatprep.mubr.f32.mxu0 %v1849_v36  ;;  %v3976_v36 = vshrl.u32 %v2356_v34, 7 }
 0x35e   : > { %2187 = vmatmul.mubr.f32.gmra.mrb[12].mxu0 %v1848_v37  ;;  %v1960_v37 = vpop.permute.xlu1 %1959 }
 0x35f   : > { %2191 = vmatprep.mubr.f32.mxu0 %v1851_v38 }
 0x362   : > { %2192 = vmatmul.mubr.f32.gmra.mrb[14].mxu0 %v1850_v39  ;;  %v3981_v39 = vld [vmem:[%s4107_s13] sm:$0x3] }
 0x363   : > { %2196 = vmatprep.mubr.f32.mxu0 %v1853_v40 }
 0x366   : > { %2197 = vmatmul.mubr.f32.gmra.mrb[16].mxu0 %v1852_v41  ;;  %v2367_v41 = vsub.s32 1, %v3976_v36 }
 0x367   : > { %2201 = vmatprep.mubr.f32.mxu0 %v1855_v42 }
 0x36a   : > { %2202 = vmatmul.mubr.f32.gmra.mrb[18].mxu0 %v1854_v43  ;;  %v3984_v43 = vpop.permute.xlu0 %2044 }
 0x36b   : > { %2206 = vmatprep.mubr.f32.mxu0 %v1857_v44 }
 0x36e   : > { %2207 = vmatmul.mubr.f32.gmra.mrb[20].mxu0 %v1856_v45  ;;  %v2368_v45 = vrot.slane %v3981_v39, %v2367_v41 }
 0x36f   : > { %2211 = vmatprep.mubr.f32.mxu0 %v1859_v46 }
 0x370   : > { %2435 = vmatprep.mubr.f32.mxu1 %v2368_v45 }
 0x372   : > { %2212 = vmatmul.mubr.f32.gmra.mrb[22].mxu0 %v1858_v47 }
 0x373   : > { %2216 = vmatprep.mubr.f32.mxu0 %v1861_v48  ;;  %v3987_v48 = vpop.permute.xlu1 %2049 }
 0x376   : > { %2217 = vmatmul.mubr.f32.gmra.mrb[24].mxu0 %v1860_v49 }
 0x377   : > { %2221 = vmatprep.mubr.f32.mxu0 %v1863_v50 }
 0x37a   : > { %2222 = vmatmul.mubr.f32.gmra.mrb[26].mxu0 %v1862_v51 }
 0x37b   : > { %2226 = vmatprep.mubr.f32.mxu0 %v1865_v52 }
 0x37e   : > { %2227 = vmatmul.mubr.f32.gmra.mrb[28].mxu0 %v1864_v53 }
 0x37f   : > { %2231 = vmatprep.mubr.f32.mxu0 %v1867_v54  ;;  %v1965_v54 = vpop.permute.xlu0 %1964 }
 0x382   : > { %2232 = vmatmul.mubr.f32.gmra.mrb[30].mxu0 %v1866_v55 }
 0x383   : > { %2236 = vmatprep.mubr.f32.mxu0 %v1869_v56  ;;  %v1970_v56 = vpop.permute.xlu1 %1969 }
 0x386   : > { %2237 = vmatmul.mubr.f32.gmra.mrb[32].mxu0 %v1868_v57 }
 0x387   : > { %2241 = vmatprep.mubr.f32.mxu0 %v1871_v58 }
 0x38a   : > { %2242 = vmatmul.mubr.f32.gmra.mrb[34].mxu0 %v1870_v59 }
 0x38b   : > { %2246 = vmatprep.mubr.f32.mxu0 %v1873_v60 }
 0x38e   : > { %2247 = vmatmul.mubr.f32.gmra.mrb[36].mxu0 %v1872_v61 }
 0x38f   : > { %2251 = vmatprep.mubr.f32.mxu0 %v1875_v62  ;;  %v3991_v62 = vpop.permute.xlu0 %2054 }
 0x392   : > { %2252 = vmatmul.mubr.f32.gmra.mrb[38].mxu0 %v1874_v63 }
 0x393   : > { %2256 = vmatprep.mubr.f32.mxu0 %v1877_v0 }
 0x396   : > { %2257 = vmatmul.mubr.f32.gmra.mrb[40].mxu0 %v1876_v1 }
 0x397   : > { %2261 = vmatprep.mubr.f32.mxu0 %v1879_v2  ;;  %v3995_v2 = vpop.permute.xlu1 %2059 }
 0x39a   : > { %2262 = vmatmul.mubr.f32.gmra.mrb[42].mxu0 %v1878_v3 }
 0x39b   : > { %2266 = vmatprep.mubr.f32.mxu0 %v1881_v4 }
 0x39e   : > { %2267 = vmatmul.mubr.f32.gmra.mrb[44].mxu0 %v1880_v5 }
 0x39f   : > { %2271 = vmatprep.mubr.f32.mxu0 %v1883_v7 }
 0x3a2   : > { %2272 = vmatmul.mubr.f32.gmra.mrb[46].mxu0 %v1882_v8  ;;  %v1975_v8 = vpop.permute.xlu0 %1974 }
 0x3a3   : > { %2276 = vmatprep.mubr.f32.mxu0 %v1885_v9 }
 0x3a6   : > { %2277 = vmatmul.mubr.f32.gmra.mrb[48].mxu0 %v1884_v10 }
 0x3a7   : > { %2281 = vmatprep.mubr.f32.mxu0 %v1887_v11  ;;  %v1980_v11 = vpop.permute.xlu1 %1979 }
 0x3aa   : > { %2282 = vmatmul.mubr.f32.gmra.mrb[50].mxu0 %v1886_v12 }
 0x3ab   : > { %2286 = vmatprep.mubr.f32.mxu0 %v1889_v13 }
 0x3ae   : > { %2287 = vmatmul.mubr.f32.gmra.mrb[52].mxu0 %v1888_v14 }
 0x3af   : > { %2291 = vmatprep.mubr.f32.mxu0 %v1891_v15 }
 0x3b2   : > { %2292 = vmatmul.mubr.f32.gmra.mrb[54].mxu0 %v1890_v16  ;;  %v3999_v16 = vpop.permute.xlu0 %2064 }
 0x3b3   : > { %2296 = vmatprep.mubr.f32.mxu0 %v1893_v17 }
 0x3b6   : > { %2297 = vmatmul.mubr.f32.gmra.mrb[56].mxu0 %v1892_v18 }
 0x3b7   : > { %2301 = vmatprep.mubr.f32.mxu0 %v1895_v19 }
 0x3ba   : > { %2302 = vmatmul.mubr.f32.gmra.mrb[58].mxu0 %v1894_v20  ;;  %v4001_v20 = vpop.permute.xlu1 %2069 }
 0x3bb   : > { %2306 = vmatprep.mubr.f32.mxu0 %v1897_v21 }
 0x3be   : > { %2307 = vmatmul.mubr.f32.gmra.mrb[60].mxu0 %v1896_v22 }
 0x3bf   : > { %2311 = vmatprep.mubr.f32.mxu0 %v1899_v23 }
 0x3c2   : > { %2312 = vmatmul.mubr.f32.gmra.mrb[62].mxu0 %v1898_v24 }
 0x419   : > { %v2158_v38 = vpop.f32.mrb[0].mxu0 }
 0x41a   : > { %v2160_v40 = vpop.f32.mrb[1].mxu0  ;;  %v2159_v42 = vadd.f32 %v2158_v38, %v1935_v27 }
 0x41c   : > { %v2317_v49 = vmax.f32 %v2159_v42, 0.0 }
 0x41d   : > { %v2163_v44 = vpop.f32.mrb[2].mxu0 }
 0x41e   : > { %v2164_v46 = vadd.f32 %v2163_v44, %v1940_v28  ;;  %v2165_v47 = vpop.f32.mrb[3].mxu0  ;;  %v1985_v28 = vpop.permute.xlu0 %1984 }
 0x420   : > { %v2318_v50 = vmax.f32 %v2164_v46, 0.0 }
 0x421   : > { %v2168_v51 = vpop.f32.mrb[4].mxu0 }
 0x422   : > { %v3989_v52 = vpack.c.bf16 %v2318_v50, %v2317_v49  ;;  %v2170_v53 = vpop.f32.mrb[5].mxu0  ;;  %v2169_v55 = vadd.f32 %v2168_v51, %v1945_v30  ;;  %v4005_v41 = vpop.permute.xlu0 %2074 }
 0x424   : > { %v2319_v60 = vmax.f32 %v2169_v55, 0.0 }
 0x425   : > { %v2173_v57 = vpop.f32.mrb[6].mxu0 }
 0x426   : > { %v2174_v58 = vadd.f32 %v2173_v57, %v1950_v31  ;;  %v2175_v59 = vpop.f32.mrb[7].mxu0  ;;  %v1990_v31 = vpop.permute.xlu1 %1989 }
 0x427   : > { %v1995_v53 = vpop.permute.xlu0 %1994 }
 0x428   : > { %v2320_v61 = vmax.f32 %v2174_v58, 0.0 }
 0x429   : > { %v2178_v63 = vpop.f32.mrb[8].mxu0 }
 0x42a   : > { %v3993_v0 = vpack.c.bf16 %v2320_v61, %v2319_v60  ;;  %v2180_v1 = vpop.f32.mrb[9].mxu0  ;;  %v2179_v3 = vadd.f32 %v2178_v63, %v1955_v35  ;;  %v4009_v46 = vpop.permute.xlu1 %2079 }
 0x42b   : > { %v4013_v61 = vpop.permute.xlu0 %2084 }
 0x42c   : > { %v2321_v9 = vmax.f32 %v2179_v3, 0.0 }
 0x42d   : > { %v2183_v4 = vpop.f32.mrb[10].mxu0 }
 0x42e   : > { %v2184_v5 = vadd.f32 %v2183_v4, %v1960_v37  ;;  %v2185_v7 = vpop.f32.mrb[11].mxu0 }
 0x430   : > { %v2322_v10 = vmax.f32 %v2184_v5, 0.0 }
 0x431   : > { %v2188_v12 = vpop.f32.mrb[12].mxu0 }
 0x432   : > { %v3997_v13 = vpack.c.bf16 %v2322_v10, %v2321_v9  ;;  %v2190_v14 = vpop.f32.mrb[13].mxu0  ;;  %v2189_v15 = vadd.f32 %v2188_v12, %v1965_v54 }
 0x434   : > { %v2323_v21 = vmax.f32 %v2189_v15, 0.0 }
 0x435   : > { %v2193_v17 = vpop.f32.mrb[14].mxu0 }
 0x436   : > { %v2194_v18 = vadd.f32 %v2193_v17, %v1970_v56  ;;  %v2195_v19 = vpop.f32.mrb[15].mxu0  ;;  %v2000_v56 = vpop.permute.xlu1 %1999 }
 0x438   : > { %v2324_v22 = vmax.f32 %v2194_v18, 0.0 }
 0x439   : > { %v2198_v23 = vpop.f32.mrb[16].mxu0 }
 0x43a   : > { %v4003_v24 = vpack.c.bf16 %v2324_v22, %v2323_v21  ;;  %v2200_v27 = vpop.f32.mrb[17].mxu0  ;;  %v2199_v30 = vadd.f32 %v2198_v23, %v1975_v8  ;;  %v4015_v4 = vpop.permute.xlu1 %2089 }
 0x43c   : > { %v2325_v38 = vmax.f32 %v2199_v30, 0.0 }
 0x43d   : > { %v2203_v34 = vpop.f32.mrb[18].mxu0 }
 0x43e   : > { %v2204_v35 = vadd.f32 %v2203_v34, %v1980_v11  ;;  %v2205_v37 = vpop.f32.mrb[19].mxu0  ;;  %v2005_v11 = vpop.permute.xlu0 %2004 }
 0x43f   : > { %v2010_v14 = vpop.permute.xlu1 %2009 }
 0x440   : > { %v2326_v40 = vmax.f32 %v2204_v35, 0.0 }
 0x441   : > { %v2208_v42 = vpop.f32.mrb[20].mxu0 }
 0x442   : > { %v4007_v44 = vpack.c.bf16 %v2326_v40, %v2325_v38  ;;  %v2210_v45 = vpop.f32.mrb[21].mxu0  ;;  %v2209_v47 = vadd.f32 %v2208_v42, %v1985_v28 }
 0x444   : > { %v2327_v54 = vmax.f32 %v2209_v47, 0.0 }
 0x445   : > { %v2213_v49 = vpop.f32.mrb[22].mxu0 }
 0x446   : > { %v2214_v50 = vadd.f32 %v2213_v49, %v1990_v31  ;;  %v2215_v51 = vpop.f32.mrb[23].mxu0 }
 0x448   : > { %v2328_v55 = vmax.f32 %v2214_v50, 0.0 }
 0x449   : > { %v2218_v57 = vpop.f32.mrb[24].mxu0 }
 0x44a   : > { %v4011_v58 = vpack.c.bf16 %v2328_v55, %v2327_v54  ;;  %v2220_v59 = vpop.f32.mrb[25].mxu0  ;;  %v2219_v60 = vadd.f32 %v2218_v57, %v1995_v53 }
 0x44c   : > { %v2329_v5 = vmax.f32 %v2219_v60, 0.0 }
 0x44d   : > { %v2223_v63 = vpop.f32.mrb[26].mxu0 }
 0x44e   : > { %v2224_v1 = vadd.f32 %v2223_v63, %v2000_v56  ;;  %v2225_v3 = vpop.f32.mrb[27].mxu0 }
 0x450   : > { %v2330_v7 = vmax.f32 %v2224_v1, 0.0 }
 0x451   : > { %v2228_v8 = vpop.f32.mrb[28].mxu0 }
 0x452   : > { %v4017_v9 = vpack.c.bf16 %v2330_v7, %v2329_v5  ;;  %v2230_v10 = vpop.f32.mrb[29].mxu0  ;;  %v2229_v12 = vadd.f32 %v2228_v8, %v2005_v11 }
 0x454   : > { %v2331_v19 = vmax.f32 %v2229_v12, 0.0 }
 0x455   : > { %v2233_v15 = vpop.f32.mrb[30].mxu0 }
 0x456   : > { %v2234_v17 = vadd.f32 %v2233_v15, %v2010_v14  ;;  %v2235_v18 = vpop.f32.mrb[31].mxu0 }
 0x458   : > { %v2332_v21 = vmax.f32 %v2234_v17, 0.0 }
 0x459   : > { %v2238_v22 = vpop.f32.mrb[32].mxu0 }
 0x45a   : > { %v4019_v23 = vpack.c.bf16 %v2332_v21, %v2331_v19  ;;  %v2240_v27 = vpop.f32.mrb[33].mxu0  ;;  %v2239_v28 = vadd.f32 %v2238_v22, %v3964_v25 }
 0x45c   : > { %v2333_v35 = vmax.f32 %v2239_v28, 0.0 }
 0x45d   : > { %v2243_v30 = vpop.f32.mrb[34].mxu0 }
 0x45e   : > { %v2244_v31 = vadd.f32 %v2243_v30, %v3966_v26  ;;  %v2245_v34 = vpop.f32.mrb[35].mxu0 }
 0x460   : > { %v2334_v37 = vmax.f32 %v2244_v31, 0.0 }
 0x461   : > { %v2248_v38 = vpop.f32.mrb[36].mxu0 }
 0x462   : > { %v2927_v40 = vpack.c.bf16 %v2334_v37, %v2333_v35  ;;  %v2250_v42 = vpop.f32.mrb[37].mxu0  ;;  %v2249_v45 = vadd.f32 %v2248_v38, %v3968_v6 }
 0x464   : > { %2928 = vmatprep.subr.bf16.mxu1 %v2927_v40  ;;  %v2335_v51 = vmax.f32 %v2249_v45, 0.0 }
 0x465   : > { %v2253_v47 = vpop.f32.mrb[38].mxu0  ;;  %2930 = vmatpush3.bf16.msra.mxu1 %v3989_v52 }
 0x466   : > { %v2254_v49 = vadd.f32 %v2253_v47, %v3970_v29  ;;  %v2255_v50 = vpop.f32.mrb[39].mxu0 }
 0x468   : > { %v2336_v25 = vmax.f32 %v2254_v49, 0.0 }
 0x469   : > { %v2258_v53 = vpop.f32.mrb[40].mxu0 }
 0x46a   : > { %v2931_v54 = vpack.c.bf16 %v2336_v25, %v2335_v51  ;;  %v2260_v26 = vpop.f32.mrb[41].mxu0  ;;  %v2259_v55 = vadd.f32 %v2258_v53, %v3972_v32 }
 0x46c   : > { %2932 = vmatprep.subr.bf16.mxu1 %v2931_v54  ;;  %v2337_v59 = vmax.f32 %v2259_v55, 0.0 }
 0x46d   : > { %v2263_v56 = vpop.f32.mrb[42].mxu0  ;;  %2934 = vmatpush3.bf16.msra.mxu1 %v3993_v0 }
 0x46e   : > { %v2264_v6 = vadd.f32 %v2263_v56, %v3974_v33  ;;  %v2265_v57 = vpop.f32.mrb[43].mxu0 }
 0x470   : > { %v2338_v60 = vmax.f32 %v2264_v6, 0.0 }
 0x471   : > { %v2268_v52 = vpop.f32.mrb[44].mxu0 }
 0x472   : > { %v2935_v63 = vpack.c.bf16 %v2338_v60, %v2337_v59  ;;  %v2270_v29 = vpop.f32.mrb[45].mxu0  ;;  %v2269_v1 = vadd.f32 %v2268_v52, %v3984_v43 }
 0x474   : > { %2936 = vmatprep.subr.bf16.mxu1 %v2935_v63  ;;  %v2339_v7 = vmax.f32 %v2269_v1, 0.0 }
 0x475   : > { %v2273_v3 = vpop.f32.mrb[46].mxu0  ;;  %2938 = vmatpush3.bf16.msra.mxu1 %v3997_v13 }
 0x476   : > { %v2274_v32 = vadd.f32 %v2273_v3, %v3987_v48  ;;  %v2275_v5 = vpop.f32.mrb[47].mxu0 }
 0x478   : > { %v2340_v8 = vmax.f32 %v2274_v32, 0.0 }
 0x479   : > { %v2278_v0 = vpop.f32.mrb[48].mxu0 }
 0x47a   : > { %v2939_v10 = vpack.c.bf16 %v2340_v8, %v2339_v7  ;;  %v2280_v33 = vpop.f32.mrb[49].mxu0  ;;  %v2279_v11 = vadd.f32 %v2278_v0, %v3991_v62 }
 0x47c   : > { %2940 = vmatprep.subr.bf16.mxu1 %v2939_v10  ;;  %v2341_v15 = vmax.f32 %v2279_v11, 0.0 }
 0x47d   : > { %v2283_v12 = vpop.f32.mrb[50].mxu0  ;;  %2942 = vmatpush3.bf16.msra.mxu1 %v4003_v24 }
 0x47e   : > { %v2284_v43 = vadd.f32 %v2283_v12, %v3995_v2  ;;  %v2285_v14 = vpop.f32.mrb[51].mxu0 }
 0x480   : > { %v2342_v17 = vmax.f32 %v2284_v43, 0.0 }
 0x481   : > { %v2288_v13 = vpop.f32.mrb[52].mxu0 }
 0x482   : > { %v2943_v18 = vpack.c.bf16 %v2342_v17, %v2341_v15  ;;  %v2290_v48 = vpop.f32.mrb[53].mxu0  ;;  %v2289_v19 = vadd.f32 %v2288_v13, %v3999_v16 }
 0x484   : > { %2944 = vmatprep.subr.bf16.mxu1 %v2943_v18  ;;  %v2343_v27 = vmax.f32 %v2289_v19, 0.0 }
 0x485   : > { %v2293_v21 = vpop.f32.mrb[54].mxu0  ;;  %2946 = vmatpush3.bf16.msra.mxu1 %v4007_v44 }
 0x486   : > { %v2294_v62 = vadd.f32 %v2293_v21, %v4001_v20  ;;  %v2295_v22 = vpop.f32.mrb[55].mxu0 }
 0x488   : > { %v2344_v28 = vmax.f32 %v2294_v62, 0.0 }
 0x489   : > { %v2298_v24 = vpop.f32.mrb[56].mxu0 }
 0x48a   : > { %v2947_v30 = vpack.c.bf16 %v2344_v28, %v2343_v27  ;;  %v2300_v2 = vpop.f32.mrb[57].mxu0  ;;  %v2299_v31 = vadd.f32 %v2298_v24, %v4005_v41 }
 0x48c   : > { %2948 = vmatprep.subr.bf16.mxu1 %v2947_v30  ;;  %v2345_v37 = vmax.f32 %v2299_v31, 0.0 }
 0x48d   : > { %v2303_v34 = vpop.f32.mrb[58].mxu0  ;;  %2950 = vmatpush3.bf16.msra.mxu1 %v4011_v58 }
 0x48e   : > { %v2304_v16 = vadd.f32 %v2303_v34, %v4009_v46  ;;  %v2305_v35 = vpop.f32.mrb[59].mxu0  ;;  %v2358_v46 = vsub.s32 0, %v3976_v36 }
 0x490   : > { %v2346_v38 = vmax.f32 %v2304_v16, 0.0  ;;  %v2364_v51 = vrot.slane %v3981_v39, %v2358_v46 }
 0x491   : > { %v2308_v44 = vpop.f32.mrb[60].mxu0 }
 0x492   : > { %v2951_v40 = vpack.c.bf16 %v2346_v38, %v2345_v37  ;;  %v2310_v20 = vpop.f32.mrb[61].mxu0  ;;  %v2309_v42 = vadd.f32 %v2308_v44, %v4013_v61  ;;  %v2354_v61 = vpop.permute.xlu0 %2353 }
 0x494   : > { %2952 = vmatprep.subr.bf16.mxu1 %v2951_v40  ;;  %v2347_v58 = vmax.f32 %v2309_v42, 0.0 }
 0x495   : > { %v2313_v45 = vpop.f32.mrb[62].mxu0  ;;  %2954 = vmatpush3.bf16.msra.mxu1 %v4017_v9 }
 0x496   : > { %v2314_v41 = vadd.f32 %v2313_v45, %v4015_v4  ;;  %v2315_v47 = vpop.f32.mrb[63].mxu0  ;;  %v2359_v4 = vrot.slane %v2354_v61, %v2358_v46 }
 0x498   : > { %v2348_v49 = vmax.f32 %v2314_v41, 0.0 }
 0x49a   : > { %v2955_v50 = vpack.c.bf16 %v2348_v49, %v2347_v58 }
 0x49c   : > { %2956 = vmatprep.subr.bf16.mxu1 %v2955_v50 }
 0x49d   : > { %2958 = vmatpush3.bf16.msra.mxu1 %v4019_v23 }
 0x4a0   : > { %2436 = vmatmul.mubr.f32.vlgmr.msra.gmra.mrb[42].mxu1 %v2364_v51 }
 0x573   : > { %v2721_v25 = vpop.f32.mrb[42].mxu1 }
 0x574   : > { %v2722_v53 = vpop.f32.mrb[43].mxu1 }
 0x575   : > { %v2723_v9 = vadd.f32 %v2722_v53, %v2721_v25 }
 0x577   : > { %v2438_v54 = vadd.f32 %v2723_v9, %v2359_v4 }
 0x579   : > { %2441 = vst [vmem:[%s497_s25] sm:$0x1] %v2438_v54 }
 0x57a   : > { %3047 = shalt.err (!%p3044_p3)
}
 0x57b   : > { %s3048_s22 = scalar_lea.hbm %s4052_s26, 16  ;;  %s3052_s18 = scalar_lea.hbm %s4109_s15, 32 }
 0x57c   : > { %p3049_p4 = scmp.ne.s32.totalorder %s4052_s26, %s3048_s22  ;;  %p3053_p9 = scmp.lt.u32.totalorder %s4052_s26, %s4109_s15 }
 0x57d   : > { %p3054_p10 = scmp.lt.u32.totalorder %s3052_s18, %s3048_s22  ;;  %p3056_p12 = scmp.lt.u32.totalorder %s3048_s22, %s4052_s26 }
 0x57e   : > { %p3050_p7 = pnand %p3049_p4, %p3222_p5 }
 0x57f   : > { %p3055_p11 = por %p3054_p10, %p3053_p9 }
 0x580   : > { %p3051_p8 = pneg %p3050_p7 }
 0x581   : > { %p3057_p13 = por %p3056_p12, %p3055_p11 }
 0x583   : > { %p3058_p0 = pnand %p3057_p13, %p3051_p8 }
 0x585   : > { %3061 = shalt.err (!%p3058_p0)
}
 0x586   : > { %2991 = dma.vmem_to_hbm [thread:$0]  (%p3222_p5), %s4054_s30, 16, %s4052_s26, %s2443_s27  }
 0x587 PF: > { %p2997_p1 = scmp.ge.s32.totalorder %s3096_s23, 2  ;;  %s2467_s28 = sand.u32 1, %s3084_s20  }
 0x588   : > { %s2468_s16 = scalar_lea.sflag [#allocation4], %s2467_s28 }
 0x589   : > { %p2994_p2 = pnand %p2997_p1, %p3226_p6 }
 0x58b   : > { %3079 = dma.done.wait (!%p2994_p2), %s2468_s16, 16  }
 0x58c   : > { %3081 = vsyncadd (!%p2994_p2), %s2468_s16, 4294967280  ;;  %s4121_s23 = sld [smem:[#allocation7_spill]]  ;;  %s4122_s22 = sld [smem:[#allocation6_spill]] }
 0x58d   : > { %s4123_s17 = sld [smem:[#allocation8_spill]]  ;;  %s4124_s20 = smov %s3088_s21 }
 0x592   : > { %p27_p3 = scmp.ge.s32.totalorder %s4121_s23, 4   ;;  %s4125_s21 = smov %s4122_s22 }
 0x593   : > { %s4126_s22 = smov %s4123_s17 }
 0x594   :  { %29 = sbr.rel (!%p27_p3) target bundleno = 6 (0x6), region = 118 }
 0x59b   :  { %2472 = vsyncpa [#allocation4], 1 }
 0x59c   :  { %2474 = vsyncpa [#allocation4 + $0x1], 1 }

</bundles_post_ra>
